<compile_context>
chip_gen: v6e
topology: v6e:2x2x1
jax: 0.10.0
libtpu: 0.0.40
codegen_flags: <defaults>
</compile_context>

<pallas_src>
import functools

import jax
import jax.numpy as jnp
import numpy as np
from jax.experimental import pallas as pl
from jax.experimental.pallas import tpu as pltpu


NUM_CLASSES = 21
CPAD = 128                      # lane-dense channel padding (zero pad is exact)
VMEM_LIMIT = 32 * 1024 * 1024   # fits all of v5e/v6e/v7x scoped VMEM


def _round_up(v, m):
    return (v + m - 1) // m * m


# ----------------------------------------------------------------------------
# Pallas kernel 1: tiled matmul + bias + optional ReLU, f32 accumulator
# ----------------------------------------------------------------------------
def _mm_bias_act_kernel(x_ref, w_ref, b_ref, o_ref, acc_ref, *, relu):
    k = pl.program_id(2)

    @pl.when(k == 0)
    def _():
        acc_ref[...] = jnp.zeros_like(acc_ref)

    acc_ref[...] += jnp.dot(x_ref[...], w_ref[...],
                            preferred_element_type=jnp.float32)

    @pl.when(k == pl.num_programs(2) - 1)
    def _():
        out = acc_ref[...] + b_ref[...]
        if relu:
            out = jnp.maximum(out, 0.0)
        o_ref[...] = out.astype(o_ref.dtype)


def pallas_matmul(x, w, b=None, relu=False, out_dtype=jnp.float32):
    """out = relu?(x @ w + b).  x:(M,K) w:(K,N) -> (M,N) in out_dtype.

    Operands are cast to bf16 (f32 accumulation on the MXU); M/K/N are padded
    so the Pallas blocks are sublane/lane aligned and the stores lane-dense.
    """
    M, K = x.shape
    K2, N = w.shape
    assert K == K2
    if b is None:
        b = jnp.zeros((N,), jnp.float32)

    # Tile selection: lane-dense N (multiple of 128), sublane-aligned M
    # (multiple of 16 for bf16 packing), K tiles a multiple of 128.
    Mp0 = _round_up(max(M, 16), 16)
    tm = Mp0 if Mp0 <= 256 else 256
    Mp = _round_up(M, tm)
    Np0 = _round_up(N, 128)
    tn = Np0 if Np0 <= 256 else 256
    Np = _round_up(N, tn)
    Kp = _round_up(K, 128)
    tk = 128
    for cand in range(512, 0, -128):
        if Kp % cand == 0:
            tk = cand
            break

    def pad2(a, s0, s1, dt):
        a = a.astype(dt)
        if a.shape == (s0, s1):
            return a
        return jnp.pad(a, ((0, s0 - a.shape[0]), (0, s1 - a.shape[1])))

    xp = pad2(x, Mp, Kp, jnp.bfloat16)
    wp = pad2(w, Kp, Np, jnp.bfloat16)
    bp = pad2(b.reshape(1, N), 1, Np, jnp.float32)

    kernel = functools.partial(_mm_bias_act_kernel, relu=relu)
    out = pl.pallas_call(
        kernel,
        out_shape=jax.ShapeDtypeStruct((Mp, Np), out_dtype),
        grid_spec=pltpu.PrefetchScalarGridSpec(
            num_scalar_prefetch=0,
            grid=(Mp // tm, Np // tn, Kp // tk),
            in_specs=[
                pl.BlockSpec((tm, tk), lambda i, j, k: (i, k)),
                pl.BlockSpec((tk, tn), lambda i, j, k: (k, j)),
                pl.BlockSpec((1, tn), lambda i, j, k: (0, j)),
            ],
            out_specs=pl.BlockSpec((tm, tn), lambda i, j, k: (i, j)),
            scratch_shapes=[pltpu.VMEM((tm, tn), jnp.float32)],
        ),
        compiler_params=pltpu.CompilerParams(
            dimension_semantics=("parallel", "parallel", "arbitrary"),
            vmem_limit_bytes=VMEM_LIMIT,
        ),
    )(xp, wp, bp)

    if Mp == M and Np == N:
        return out
    return out[:M, :N]


# ----------------------------------------------------------------------------
# Pallas kernel 2: fused ASPP concat + 1x1 projection + bias + ReLU
#   out = relu(b0@w0 + b1@w1 + b2@w2 + b3@w3 + bias)
# (avoids materializing the (M, 4*C) concatenated tensor in HBM)
# ----------------------------------------------------------------------------
def _aspp_proj_kernel(b0_ref, b1_ref, b2_ref, b3_ref,
                      w0_ref, w1_ref, w2_ref, w3_ref, bias_ref, o_ref):
    acc = jnp.dot(b0_ref[...], w0_ref[...], preferred_element_type=jnp.float32)
    acc = acc + jnp.dot(b1_ref[...], w1_ref[...],
                        preferred_element_type=jnp.float32)
    acc = acc + jnp.dot(b2_ref[...], w2_ref[...],
                        preferred_element_type=jnp.float32)
    acc = acc + jnp.dot(b3_ref[...], w3_ref[...],
                        preferred_element_type=jnp.float32)
    acc = acc + bias_ref[...]
    o_ref[...] = jnp.maximum(acc, 0.0).astype(o_ref.dtype)


def aspp_project(branches, w_chunks, bias, out_dtype=jnp.bfloat16):
    """branches: 4 x (M, CPAD); w_chunks: 4 x (CPAD, CPAD); bias: (CPAD,)."""
    M, C = branches[0].shape
    Mp0 = _round_up(max(M, 16), 16)
    tm = Mp0 if Mp0 <= 256 else 256
    Mp = _round_up(M, tm)

    def padm(a):
        a = a.astype(jnp.bfloat16)
        if a.shape[0] == Mp:
            return a
        return jnp.pad(a, ((0, Mp - a.shape[0]), (0, 0)))

    bpad = [padm(a) for a in branches]
    wcast = [wc.astype(jnp.bfloat16) for wc in w_chunks]
    bias2 = bias.astype(jnp.float32).reshape(1, C)

    out = pl.pallas_call(
        _aspp_proj_kernel,
        out_shape=jax.ShapeDtypeStruct((Mp, C), out_dtype),
        grid_spec=pltpu.PrefetchScalarGridSpec(
            num_scalar_prefetch=0,
            grid=(Mp // tm,),
            in_specs=(
                [pl.BlockSpec((tm, C), lambda i: (i, 0))] * 4
                + [pl.BlockSpec((C, C), lambda i: (0, 0))] * 4
                + [pl.BlockSpec((1, C), lambda i: (0, 0))]
            ),
            out_specs=pl.BlockSpec((tm, C), lambda i: (i, 0)),
        ),
        compiler_params=pltpu.CompilerParams(
            dimension_semantics=("parallel",),
            vmem_limit_bytes=VMEM_LIMIT,
        ),
    )(*bpad, *wcast, bias2)

    if Mp == M:
        return out
    return out[:M]


# ----------------------------------------------------------------------------
# Conv2D as im2col (XLA glue) + Pallas tiled matmul
# ----------------------------------------------------------------------------
# TODO(synk): fold the KH*KW tap loop into the kernel (K-grid with
# element-offset index maps into the padded NHWC input) to avoid
# materializing the im2col patch tensor in HBM for strided/dilated convs.
def conv2d(x, w, b, stride=1, padding=0, dilation=1, relu=False,
           out_dtype=jnp.bfloat16):
    """x: (N,H,W,Cin) NHWC; w: (KH,KW,Cin,Cout) HWIO; returns NHWC."""
    N, H, W, C = x.shape
    KH, KW, Cin, Cout = w.shape
    assert Cin == C
    Ho = (H + 2 * padding - dilation * (KH - 1) - 1) // stride + 1
    Wo = (W + 2 * padding - dilation * (KW - 1) - 1) // stride + 1
    xp = jnp.pad(x, ((0, 0), (padding, padding), (padding, padding), (0, 0)))

    cols = []
    for i in range(KH):
        for j in range(KW):
            h0 = i * dilation
            w0 = j * dilation
            patch = xp[:,
                       h0:h0 + stride * (Ho - 1) + 1:stride,
                       w0:w0 + stride * (Wo - 1) + 1:stride, :]
            cols.append(patch)
    patches = jnp.concatenate(cols, axis=-1)          # (N,Ho,Wo,KH*KW*C)
    x2d = patches.reshape(N * Ho * Wo, KH * KW * C)
    w2d = w.reshape(KH * KW * C, Cout)
    out = pallas_matmul(x2d, w2d, b, relu=relu, out_dtype=out_dtype)
    return out.reshape(N, Ho, Wo, Cout)


# ----------------------------------------------------------------------------
# Bilinear upsample (align_corners=False, PyTorch semantics) as two matmuls
# with the large axis (N*spatial*C) as M and lane-padded output columns.
# ----------------------------------------------------------------------------
# TODO(synk): replace with a fused 2-tap gather + weighted-add VPU kernel to
# drop the multiply-by-zero MXU FLOPs at large upsample ratios.
def _bilinear_matrix(out_size, in_size):
    scale = in_size / out_size
    M = np.zeros((out_size, in_size), dtype=np.float32)
    for o in range(out_size):
        src = (o + 0.5) * scale - 0.5
        if src < 0.0:
            src = 0.0
        i0 = int(np.floor(src))
        i0 = min(i0, in_size - 1)
        i1 = min(i0 + 1, in_size - 1)
        lam = src - i0
        M[o, i0] += 1.0 - lam
        M[o, i1] += lam
    return jnp.asarray(M)


def bilinear_resize(x, out_h, out_w):
    """x: (N,H,W,C) -> (N,out_h,out_w,C); both contractions on the MXU."""
    N, H, W, C = x.shape
    Mh = _bilinear_matrix(out_h, H)                    # (OH, H)
    Mw = _bilinear_matrix(out_w, W)                    # (OW, W)

    # interpolate along H: (N*W*C, H) @ (H, OH)
    xt = jnp.transpose(x, (0, 2, 3, 1)).reshape(N * W * C, H)
    y = pallas_matmul(xt, Mh.T, out_dtype=jnp.float32)
    y = y.reshape(N, W, C, out_h)

    # interpolate along W: (N*OH*C, W) @ (W, OW)
    yt = jnp.transpose(y, (0, 3, 2, 1)).reshape(N * out_h * C, W)
    z = pallas_matmul(yt, Mw.T, out_dtype=jnp.float32)
    z = z.reshape(N, out_h, C, out_w)
    return jnp.transpose(z, (0, 1, 3, 2))              # (N,OH,OW,C)


# ----------------------------------------------------------------------------
# Synthetic small DeepLabV3: backbone -> ASPP -> classifier -> upsample.
# Weights are generated at real channel counts then zero-padded to CPAD so
# every Pallas matmul is lane-dense; zero padding is numerically exact.
# ----------------------------------------------------------------------------
def _pad_conv(w4, cin_p, cout_p):
    KH, KW, Ci, Co = w4.shape
    return jnp.pad(w4, ((0, 0), (0, 0), (0, cin_p - Ci), (0, cout_p - Co)))


def _pad_vec(v, n):
    return jnp.pad(v, (0, n - v.shape[0]))


def init_params(key, cin=3, cb=16, cf=32):
    ks = jax.random.split(key, 18)
    s = 0.1

    def w(k, shape):
        return s * jax.random.normal(k, shape, jnp.float32)

    def bvec(k, n):
        return s * jax.random.normal(k, (n,), jnp.float32)

    conv1_w = w(ks[0], (3, 3, cin, cb))
    conv2_w = w(ks[2], (3, 3, cb, cf))
    aspp0_w = w(ks[4], (1, 1, cf, cf))
    aspp1_w = w(ks[6], (3, 3, cf, cf))
    aspp2_w = w(ks[8], (3, 3, cf, cf))
    aspp_pool_w = w(ks[10], (cf, cf))
    aspp_proj_w = w(ks[12], (4 * cf, cf))
    cls1_w = w(ks[14], (3, 3, cf, cf))
    cls2_w = w(ks[16], (1, 1, cf, NUM_CLASSES))

    # ASPP 1x1 projection split into four per-branch (cf, cf) chunks, padded.
    proj_chunks = []
    for i in range(4):
        chunk = aspp_proj_w[i * cf:(i + 1) * cf, :]
        proj_chunks.append(jnp.pad(chunk, ((0, CPAD - cf), (0, CPAD - cf))))

    return {
        "conv1_w": _pad_conv(conv1_w, cin, CPAD),
        "conv1_b": _pad_vec(bvec(ks[1], cb), CPAD),
        "conv2_w": _pad_conv(conv2_w, CPAD, CPAD),
        "conv2_b": _pad_vec(bvec(ks[3], cf), CPAD),
        "aspp0_w": _pad_conv(aspp0_w, CPAD, CPAD),
        "aspp0_b": _pad_vec(bvec(ks[5], cf), CPAD),
        "aspp1_w": _pad_conv(aspp1_w, CPAD, CPAD),
        "aspp1_b": _pad_vec(bvec(ks[7], cf), CPAD),
        "aspp2_w": _pad_conv(aspp2_w, CPAD, CPAD),
        "aspp2_b": _pad_vec(bvec(ks[9], cf), CPAD),
        "aspp_pool_w": jnp.pad(aspp_pool_w, ((0, CPAD - cf), (0, CPAD - cf))),
        "aspp_pool_b": _pad_vec(bvec(ks[11], cf), CPAD),
        "aspp_proj_w": proj_chunks,
        "aspp_proj_b": _pad_vec(bvec(ks[13], cf), CPAD),
        "cls1_w": _pad_conv(cls1_w, CPAD, CPAD),
        "cls1_b": _pad_vec(bvec(ks[15], cf), CPAD),
        "cls2_w": _pad_conv(cls2_w, CPAD, CPAD),
        "cls2_b": _pad_vec(bvec(ks[17], NUM_CLASSES), CPAD),
    }


def deeplabv3_forward(params, x_nchw):
    """Equivalent of DeepLabV3Wrapper.forward: returns model(input)['out']."""
    N, C, H, W = x_nchw.shape
    x = jnp.transpose(x_nchw, (0, 2, 3, 1))            # NCHW -> NHWC (f32)

    # backbone (output stride 4); activations bf16, channel-padded to CPAD
    x = conv2d(x, params["conv1_w"], params["conv1_b"],
               stride=2, padding=1, relu=True)
    x = conv2d(x, params["conv2_w"], params["conv2_b"],
               stride=2, padding=1, relu=True)
    n, h, w, cpad = x.shape

    # ASPP branches (all lane-dense 128-channel)
    b0 = conv2d(x, params["aspp0_w"], params["aspp0_b"], relu=True)
    b1 = conv2d(x, params["aspp1_w"], params["aspp1_b"],
                padding=2, dilation=2, relu=True)
    b2 = conv2d(x, params["aspp2_w"], params["aspp2_b"],
                padding=3, dilation=3, relu=True)

    # image-pooling branch: GAP is a reduction -> VPU/XLA, not an MXU matmul
    pooled = jnp.mean(x.astype(jnp.float32), axis=(1, 2))          # (n, CPAD)
    pooled = pallas_matmul(pooled, params["aspp_pool_w"],
                           params["aspp_pool_b"], relu=True,
                           out_dtype=jnp.bfloat16)
    bp = jnp.broadcast_to(pooled[:, None, None, :], (n, h, w, cpad))

    # fused ASPP concat + 1x1 projection (single pallas_call, 4 branch inputs)
    M = n * h * w
    aspp = aspp_project(
        [b0.reshape(M, cpad), b1.reshape(M, cpad),
         b2.reshape(M, cpad), bp.reshape(M, cpad)],
        params["aspp_proj_w"], params["aspp_proj_b"],
        out_dtype=jnp.bfloat16).reshape(n, h, w, cpad)

    # classifier head
    y = conv2d(aspp, params["cls1_w"], params["cls1_b"], padding=1, relu=True)
    y = conv2d(y, params["cls2_w"], params["cls2_b"], relu=False,
               out_dtype=jnp.float32)

    # drop channel padding before the upsample, then bilinear resize
    y = y[..., :NUM_CLASSES]
    y = bilinear_resize(y, H, W)

    return jnp.transpose(y, (0, 3, 1, 2))              # NHWC -> NCHW


if __name__ == "__main__":
    key = jax.random.PRNGKey(0)
    pkey, xkey = jax.random.split(key)
    params = init_params(pkey)

    # input: (N, C, H, W) = (2, 3, 16, 16), matching PyTorch NCHW convention
    x = jax.random.normal(xkey, (2, 3, 16, 16), jnp.float32)

    out = jax.jit(deeplabv3_forward)(params, x)
    out = jax.block_until_ready(out)

    assert out.shape == (2, NUM_CLASSES, 16, 16), out.shape
    assert out.dtype == jnp.float32
    assert bool(jnp.all(jnp.isfinite(out)))
    print("KERNEL_OK")
</pallas_src>

<mosaic_0001>
module attributes {stable_mosaic.version = 11 : i64} {
  func.func @_mm_bias_act_kernel(%arg0: i32, %arg1: i32, %arg2: i32, %arg3: memref<128x128xbf16, #tpu.memory_space<vmem>>, %arg4: memref<128x128xbf16, #tpu.memory_space<vmem>>, %arg5: memref<1x128xf32, #tpu.memory_space<vmem>>, %arg6: memref<128x128xbf16, #tpu.memory_space<vmem>>, %arg7: memref<128x128xf32, #tpu.memory_space<vmem>>) attributes {dimension_semantics = [#tpu.dimension_semantics<parallel>, #tpu.dimension_semantics<parallel>, #tpu.dimension_semantics<arbitrary>], iteration_bounds = array<i64: 1, 1, 1>, scalar_prefetch = 0 : i64, scratch_operands = 1 : i64, tpu.core_type = #tpu.core_type<tc>, window_params = [{transform_indices = @transform_0, window_bounds = array<i64: 128, 128>}, {transform_indices = @transform_1, window_bounds = array<i64: 128, 128>}, {transform_indices = @transform_2, window_bounds = array<i64: 1, 128>}, {transform_indices = @transform_3, window_bounds = array<i64: 128, 128>}]} {
    %c0_i32 = arith.constant 0 : i32
    %0 = arith.cmpi eq, %arg2, %c0_i32 : i32
    %1 = arith.extui %0 : i1 to i32
    %c0_i32_0 = arith.constant 0 : i32
    %2 = arith.cmpi ne, %1, %c0_i32_0 : i32
    scf.if %2 {
      %cst_10 = arith.constant 0.000000e+00 : f32
      %12 = vector.broadcast %cst_10 : f32 to vector<128x128xf32>
      %c0_11 = arith.constant 0 : index
      %c0_12 = arith.constant 0 : index
      %13 = vector.load %arg7[%c0_11, %c0_12] : memref<128x128xf32, #tpu.memory_space<vmem>>, vector<128x128xf32>
      tpu.vector_store %arg7[%c0_11, %c0_12], %12 {strides = array<i32>} : memref<128x128xf32, #tpu.memory_space<vmem>>, vector<128x128xf32>,
    } else {
    }
    %c0 = arith.constant 0 : index
    %c0_1 = arith.constant 0 : index
    %3 = vector.load %arg7[%c0, %c0_1] : memref<128x128xf32, #tpu.memory_space<vmem>>, vector<128x128xf32>
    %c0_2 = arith.constant 0 : index
    %c0_3 = arith.constant 0 : index
    %4 = vector.load %arg3[%c0_2, %c0_3] : memref<128x128xbf16, #tpu.memory_space<vmem>>, vector<128x128xbf16>
    %c0_4 = arith.constant 0 : index
    %c0_5 = arith.constant 0 : index
    %5 = vector.load %arg4[%c0_4, %c0_5] : memref<128x128xbf16, #tpu.memory_space<vmem>>, vector<128x128xbf16>
    %cst = arith.constant dense<0.000000e+00> : vector<128x128xf32>
    %6 = tpu.matmul %4, %5, %cst {dimension_numbers = #tpu.dot_dimension_numbers<[1], [0], [0], [1], [0, 0, 1, 1], [], []>} : vector<128x128xbf16>, vector<128x128xbf16>, vector<128x128xf32> -> vector<128x128xf32>
    %7 = arith.addf %3, %6 : vector<128x128xf32>
    %c0_6 = arith.constant 0 : index
    %c0_7 = arith.constant 0 : index
    %8 = vector.load %arg7[%c0_6, %c0_7] : memref<128x128xf32, #tpu.memory_space<vmem>>, vector<128x128xf32>
    tpu.vector_store %arg7[%c0_6, %c0_7], %7 {strides = array<i32>} : memref<128x128xf32, #tpu.memory_space<vmem>>, vector<128x128xf32>,
    %c0_i32_8 = arith.constant 0 : i32
    %9 = arith.cmpi eq, %arg2, %c0_i32_8 : i32
    %10 = arith.extui %9 : i1 to i32
    %c0_i32_9 = arith.constant 0 : i32
    %11 = arith.cmpi ne, %10, %c0_i32_9 : i32
    scf.if %11 {
      %c0_10 = arith.constant 0 : index
      %c0_11 = arith.constant 0 : index
      %12 = vector.load %arg7[%c0_10, %c0_11] : memref<128x128xf32, #tpu.memory_space<vmem>>, vector<128x128xf32>
      %c0_12 = arith.constant 0 : index
      %c0_13 = arith.constant 0 : index
      %13 = vector.load %arg5[%c0_12, %c0_13] : memref<1x128xf32, #tpu.memory_space<vmem>>, vector<1x128xf32>
      %14 = vector.broadcast %13 : vector<1x128xf32> to vector<128x128xf32>
      %15 = arith.addf %12, %14 : vector<128x128xf32>
      %cst_14 = arith.constant 0.000000e+00 : f32
      %16 = vector.broadcast %cst_14 : f32 to vector<128x128xf32>
      %17 = arith.maximumf %15, %16 : vector<128x128xf32>
      %18 = arith.truncf %17 : vector<128x128xf32> to vector<128x128xbf16>
      %c0_15 = arith.constant 0 : index
      %c0_16 = arith.constant 0 : index
      %19 = vector.load %arg6[%c0_15, %c0_16] : memref<128x128xbf16, #tpu.memory_space<vmem>>, vector<128x128xbf16>
      tpu.vector_store %arg6[%c0_15, %c0_16], %18 {strides = array<i32>} : memref<128x128xbf16, #tpu.memory_space<vmem>>, vector<128x128xbf16>,
    } else {
    }
    return
  }
  func.func @transform_0(%arg0: i32, %arg1: i32, %arg2: i32) -> (i32, i32) {
    %c0_i32 = arith.constant 0 : i32
    return %arg0, %arg2 : i32, i32
  }
  func.func @transform_1(%arg0: i32, %arg1: i32, %arg2: i32) -> (i32, i32) {
    %c0_i32 = arith.constant 0 : i32
    return %arg2, %arg1 : i32, i32
  }
  func.func @transform_2(%arg0: i32, %arg1: i32, %arg2: i32) -> (i32, i32) {
    %c0_i32 = arith.constant 0 : i32
    %c0_i32_0 = arith.constant 0 : i32
    return %c0_i32, %arg1 : i32, i32
  }
  func.func @transform_3(%arg0: i32, %arg1: i32, %arg2: i32) -> (i32, i32) {
    %c0_i32 = arith.constant 0 : i32
    return %arg0, %arg1 : i32, i32
  }
}

module attributes {stable_mosaic.version = 11 : i64} {
  func.func @_mm_bias_act_kernel(%arg0: i32, %arg1: i32, %arg2: i32, %arg3: memref<32x384xbf16, #tpu.memory_space<vmem>>, %arg4: memref<384x128xbf16, #tpu.memory_space<vmem>>, %arg5: memref<1x128xf32, #tpu.memory_space<vmem>>, %arg6: memref<32x128xbf16, #tpu.memory_space<vmem>>, %arg7: memref<32x128xf32, #tpu.memory_space<vmem>>) attributes {dimension_semantics = [#tpu.dimension_semantics<parallel>, #tpu.dimension_semantics<parallel>, #tpu.dimension_semantics<arbitrary>], iteration_bounds = array<i64: 1, 1, 3>, scalar_prefetch = 0 : i64, scratch_operands = 1 : i64, tpu.core_type = #tpu.core_type<tc>, window_params = [{transform_indices = @transform_0, window_bounds = array<i64: 32, 384>}, {transform_indices = @transform_1, window_bounds = array<i64: 384, 128>}, {transform_indices = @transform_2, window_bounds = array<i64: 1, 128>}, {transform_indices = @transform_3, window_bounds = array<i64: 32, 128>}]} {
    %c0_i32 = arith.constant 0 : i32
    %0 = arith.cmpi eq, %arg2, %c0_i32 : i32
    %1 = arith.extui %0 : i1 to i32
    %c0_i32_0 = arith.constant 0 : i32
    %2 = arith.cmpi ne, %1, %c0_i32_0 : i32
    scf.if %2 {
      %cst_9 = arith.constant 0.000000e+00 : f32
      %12 = vector.broadcast %cst_9 : f32 to vector<32x128xf32>
      %c0_10 = arith.constant 0 : index
      %c0_11 = arith.constant 0 : index
      %13 = vector.load %arg7[%c0_10, %c0_11] : memref<32x128xf32, #tpu.memory_space<vmem>>, vector<32x128xf32>
      tpu.vector_store %arg7[%c0_10, %c0_11], %12 {strides = array<i32>} : memref<32x128xf32, #tpu.memory_space<vmem>>, vector<32x128xf32>,
    } else {
    }
    %c0 = arith.constant 0 : index
    %c0_1 = arith.constant 0 : index
    %3 = vector.load %arg7[%c0, %c0_1] : memref<32x128xf32, #tpu.memory_space<vmem>>, vector<32x128xf32>
    %c0_2 = arith.constant 0 : index
    %c0_3 = arith.constant 0 : index
    %4 = vector.load %arg3[%c0_2, %c0_3] : memref<32x384xbf16, #tpu.memory_space<vmem>>, vector<32x384xbf16>
    %c0_4 = arith.constant 0 : index
    %c0_5 = arith.constant 0 : index
    %5 = vector.load %arg4[%c0_4, %c0_5] : memref<384x128xbf16, #tpu.memory_space<vmem>>, vector<384x128xbf16>
    %cst = arith.constant dense<0.000000e+00> : vector<32x128xf32>
    %6 = tpu.matmul %4, %5, %cst {dimension_numbers = #tpu.dot_dimension_numbers<[1], [0], [0], [1], [0, 0, 1, 1], [], []>} : vector<32x384xbf16>, vector<384x128xbf16>, vector<32x128xf32> -> vector<32x128xf32>
    %7 = arith.addf %3, %6 : vector<32x128xf32>
    %c0_6 = arith.constant 0 : index
    %c0_7 = arith.constant 0 : index
    %8 = vector.load %arg7[%c0_6, %c0_7] : memref<32x128xf32, #tpu.memory_space<vmem>>, vector<32x128xf32>
    tpu.vector_store %arg7[%c0_6, %c0_7], %7 {strides = array<i32>} : memref<32x128xf32, #tpu.memory_space<vmem>>, vector<32x128xf32>,
    %c2_i32 = arith.constant 2 : i32
    %9 = arith.cmpi eq, %arg2, %c2_i32 : i32
    %10 = arith.extui %9 : i1 to i32
    %c0_i32_8 = arith.constant 0 : i32
    %11 = arith.cmpi ne, %10, %c0_i32_8 : i32
    scf.if %11 {
      %c0_9 = arith.constant 0 : index
      %c0_10 = arith.constant 0 : index
      %12 = vector.load %arg7[%c0_9, %c0_10] : memref<32x128xf32, #tpu.memory_space<vmem>>, vector<32x128xf32>
      %c0_11 = arith.constant 0 : index
      %c0_12 = arith.constant 0 : index
      %13 = vector.load %arg5[%c0_11, %c0_12] : memref<1x128xf32, #tpu.memory_space<vmem>>, vector<1x128xf32>
      %14 = vector.broadcast %13 : vector<1x128xf32> to vector<32x128xf32>
      %15 = arith.addf %12, %14 : vector<32x128xf32>
      %cst_13 = arith.constant 0.000000e+00 : f32
      %16 = vector.broadcast %cst_13 : f32 to vector<32x128xf32>
      %17 = arith.maximumf %15, %16 : vector<32x128xf32>
      %18 = arith.truncf %17 : vector<32x128xf32> to vector<32x128xbf16>
      %c0_14 = arith.constant 0 : index
      %c0_15 = arith.constant 0 : index
      %19 = vector.load %arg6[%c0_14, %c0_15] : memref<32x128xbf16, #tpu.memory_space<vmem>>, vector<32x128xbf16>
      tpu.vector_store %arg6[%c0_14, %c0_15], %18 {strides = array<i32>} : memref<32x128xbf16, #tpu.memory_space<vmem>>, vector<32x128xbf16>,
    } else {
    }
    return
  }
  func.func @transform_0(%arg0: i32, %arg1: i32, %arg2: i32) -> (i32, i32) {
    %c0_i32 = arith.constant 0 : i32
    return %arg0, %arg2 : i32, i32
  }
  func.func @transform_1(%arg0: i32, %arg1: i32, %arg2: i32) -> (i32, i32) {
    %c0_i32 = arith.constant 0 : i32
    return %arg2, %arg1 : i32, i32
  }
  func.func @transform_2(%arg0: i32, %arg1: i32, %arg2: i32) -> (i32, i32) {
    %c0_i32 = arith.constant 0 : i32
    %c0_i32_0 = arith.constant 0 : i32
    return %c0_i32, %arg1 : i32, i32
  }
  func.func @transform_3(%arg0: i32, %arg1: i32, %arg2: i32) -> (i32, i32) {
    %c0_i32 = arith.constant 0 : i32
    return %arg0, %arg1 : i32, i32
  }
}

module attributes {stable_mosaic.version = 11 : i64} {
  func.func @_mm_bias_act_kernel(%arg0: i32, %arg1: i32, %arg2: i32, %arg3: memref<32x128xbf16, #tpu.memory_space<vmem>>, %arg4: memref<128x128xbf16, #tpu.memory_space<vmem>>, %arg5: memref<1x128xf32, #tpu.memory_space<vmem>>, %arg6: memref<32x128xbf16, #tpu.memory_space<vmem>>, %arg7: memref<32x128xf32, #tpu.memory_space<vmem>>) attributes {dimension_semantics = [#tpu.dimension_semantics<parallel>, #tpu.dimension_semantics<parallel>, #tpu.dimension_semantics<arbitrary>], iteration_bounds = array<i64: 1, 1, 1>, scalar_prefetch = 0 : i64, scratch_operands = 1 : i64, tpu.core_type = #tpu.core_type<tc>, window_params = [{transform_indices = @transform_0, window_bounds = array<i64: 32, 128>}, {transform_indices = @transform_1, window_bounds = array<i64: 128, 128>}, {transform_indices = @transform_2, window_bounds = array<i64: 1, 128>}, {transform_indices = @transform_3, window_bounds = array<i64: 32, 128>}]} {
    %c0_i32 = arith.constant 0 : i32
    %0 = arith.cmpi eq, %arg2, %c0_i32 : i32
    %1 = arith.extui %0 : i1 to i32
    %c0_i32_0 = arith.constant 0 : i32
    %2 = arith.cmpi ne, %1, %c0_i32_0 : i32
    scf.if %2 {
      %cst_10 = arith.constant 0.000000e+00 : f32
      %12 = vector.broadcast %cst_10 : f32 to vector<32x128xf32>
      %c0_11 = arith.constant 0 : index
      %c0_12 = arith.constant 0 : index
      %13 = vector.load %arg7[%c0_11, %c0_12] : memref<32x128xf32, #tpu.memory_space<vmem>>, vector<32x128xf32>
      tpu.vector_store %arg7[%c0_11, %c0_12], %12 {strides = array<i32>} : memref<32x128xf32, #tpu.memory_space<vmem>>, vector<32x128xf32>,
    } else {
    }
    %c0 = arith.constant 0 : index
    %c0_1 = arith.constant 0 : index
    %3 = vector.load %arg7[%c0, %c0_1] : memref<32x128xf32, #tpu.memory_space<vmem>>, vector<32x128xf32>
    %c0_2 = arith.constant 0 : index
    %c0_3 = arith.constant 0 : index
    %4 = vector.load %arg3[%c0_2, %c0_3] : memref<32x128xbf16, #tpu.memory_space<vmem>>, vector<32x128xbf16>
    %c0_4 = arith.constant 0 : index
    %c0_5 = arith.constant 0 : index
    %5 = vector.load %arg4[%c0_4, %c0_5] : memref<128x128xbf16, #tpu.memory_space<vmem>>, vector<128x128xbf16>
    %cst = arith.constant dense<0.000000e+00> : vector<32x128xf32>
    %6 = tpu.matmul %4, %5, %cst {dimension_numbers = #tpu.dot_dimension_numbers<[1], [0], [0], [1], [0, 0, 1, 1], [], []>} : vector<32x128xbf16>, vector<128x128xbf16>, vector<32x128xf32> -> vector<32x128xf32>
    %7 = arith.addf %3, %6 : vector<32x128xf32>
    %c0_6 = arith.constant 0 : index
    %c0_7 = arith.constant 0 : index
    %8 = vector.load %arg7[%c0_6, %c0_7] : memref<32x128xf32, #tpu.memory_space<vmem>>, vector<32x128xf32>
    tpu.vector_store %arg7[%c0_6, %c0_7], %7 {strides = array<i32>} : memref<32x128xf32, #tpu.memory_space<vmem>>, vector<32x128xf32>,
    %c0_i32_8 = arith.constant 0 : i32
    %9 = arith.cmpi eq, %arg2, %c0_i32_8 : i32
    %10 = arith.extui %9 : i1 to i32
    %c0_i32_9 = arith.constant 0 : i32
    %11 = arith.cmpi ne, %10, %c0_i32_9 : i32
    scf.if %11 {
      %c0_10 = arith.constant 0 : index
      %c0_11 = arith.constant 0 : index
      %12 = vector.load %arg7[%c0_10, %c0_11] : memref<32x128xf32, #tpu.memory_space<vmem>>, vector<32x128xf32>
      %c0_12 = arith.constant 0 : index
      %c0_13 = arith.constant 0 : index
      %13 = vector.load %arg5[%c0_12, %c0_13] : memref<1x128xf32, #tpu.memory_space<vmem>>, vector<1x128xf32>
      %14 = vector.broadcast %13 : vector<1x128xf32> to vector<32x128xf32>
      %15 = arith.addf %12, %14 : vector<32x128xf32>
      %cst_14 = arith.constant 0.000000e+00 : f32
      %16 = vector.broadcast %cst_14 : f32 to vector<32x128xf32>
      %17 = arith.maximumf %15, %16 : vector<32x128xf32>
      %18 = arith.truncf %17 : vector<32x128xf32> to vector<32x128xbf16>
      %c0_15 = arith.constant 0 : index
      %c0_16 = arith.constant 0 : index
      %19 = vector.load %arg6[%c0_15, %c0_16] : memref<32x128xbf16, #tpu.memory_space<vmem>>, vector<32x128xbf16>
      tpu.vector_store %arg6[%c0_15, %c0_16], %18 {strides = array<i32>} : memref<32x128xbf16, #tpu.memory_space<vmem>>, vector<32x128xbf16>,
    } else {
    }
    return
  }
  func.func @transform_0(%arg0: i32, %arg1: i32, %arg2: i32) -> (i32, i32) {
    %c0_i32 = arith.constant 0 : i32
    return %arg0, %arg2 : i32, i32
  }
  func.func @transform_1(%arg0: i32, %arg1: i32, %arg2: i32) -> (i32, i32) {
    %c0_i32 = arith.constant 0 : i32
    return %arg2, %arg1 : i32, i32
  }
  func.func @transform_2(%arg0: i32, %arg1: i32, %arg2: i32) -> (i32, i32) {
    %c0_i32 = arith.constant 0 : i32
    %c0_i32_0 = arith.constant 0 : i32
    return %c0_i32, %arg1 : i32, i32
  }
  func.func @transform_3(%arg0: i32, %arg1: i32, %arg2: i32) -> (i32, i32) {
    %c0_i32 = arith.constant 0 : i32
    return %arg0, %arg1 : i32, i32
  }
}

module attributes {stable_mosaic.version = 11 : i64} {
  func.func @_mm_bias_act_kernel(%arg0: i32, %arg1: i32, %arg2: i32, %arg3: memref<16x128xbf16, #tpu.memory_space<vmem>>, %arg4: memref<128x128xbf16, #tpu.memory_space<vmem>>, %arg5: memref<1x128xf32, #tpu.memory_space<vmem>>, %arg6: memref<16x128xbf16, #tpu.memory_space<vmem>>, %arg7: memref<16x128xf32, #tpu.memory_space<vmem>>) attributes {dimension_semantics = [#tpu.dimension_semantics<parallel>, #tpu.dimension_semantics<parallel>, #tpu.dimension_semantics<arbitrary>], iteration_bounds = array<i64: 1, 1, 1>, scalar_prefetch = 0 : i64, scratch_operands = 1 : i64, tpu.core_type = #tpu.core_type<tc>, window_params = [{transform_indices = @transform_0, window_bounds = array<i64: 16, 128>}, {transform_indices = @transform_1, window_bounds = array<i64: 128, 128>}, {transform_indices = @transform_2, window_bounds = array<i64: 1, 128>}, {transform_indices = @transform_3, window_bounds = array<i64: 16, 128>}]} {
    %c0_i32 = arith.constant 0 : i32
    %0 = arith.cmpi eq, %arg2, %c0_i32 : i32
    %1 = arith.extui %0 : i1 to i32
    %c0_i32_0 = arith.constant 0 : i32
    %2 = arith.cmpi ne, %1, %c0_i32_0 : i32
    scf.if %2 {
      %cst_10 = arith.constant 0.000000e+00 : f32
      %12 = vector.broadcast %cst_10 : f32 to vector<16x128xf32>
      %c0_11 = arith.constant 0 : index
      %c0_12 = arith.constant 0 : index
      %13 = vector.load %arg7[%c0_11, %c0_12] : memref<16x128xf32, #tpu.memory_space<vmem>>, vector<16x128xf32>
      tpu.vector_store %arg7[%c0_11, %c0_12], %12 {strides = array<i32>} : memref<16x128xf32, #tpu.memory_space<vmem>>, vector<16x128xf32>,
    } else {
    }
    %c0 = arith.constant 0 : index
    %c0_1 = arith.constant 0 : index
    %3 = vector.load %arg7[%c0, %c0_1] : memref<16x128xf32, #tpu.memory_space<vmem>>, vector<16x128xf32>
    %c0_2 = arith.constant 0 : index
    %c0_3 = arith.constant 0 : index
    %4 = vector.load %arg3[%c0_2, %c0_3] : memref<16x128xbf16, #tpu.memory_space<vmem>>, vector<16x128xbf16>
    %c0_4 = arith.constant 0 : index
    %c0_5 = arith.constant 0 : index
    %5 = vector.load %arg4[%c0_4, %c0_5] : memref<128x128xbf16, #tpu.memory_space<vmem>>, vector<128x128xbf16>
    %cst = arith.constant dense<0.000000e+00> : vector<16x128xf32>
    %6 = tpu.matmul %4, %5, %cst {dimension_numbers = #tpu.dot_dimension_numbers<[1], [0], [0], [1], [0, 0, 1, 1], [], []>} : vector<16x128xbf16>, vector<128x128xbf16>, vector<16x128xf32> -> vector<16x128xf32>
    %7 = arith.addf %3, %6 : vector<16x128xf32>
    %c0_6 = arith.constant 0 : index
    %c0_7 = arith.constant 0 : index
    %8 = vector.load %arg7[%c0_6, %c0_7] : memref<16x128xf32, #tpu.memory_space<vmem>>, vector<16x128xf32>
    tpu.vector_store %arg7[%c0_6, %c0_7], %7 {strides = array<i32>} : memref<16x128xf32, #tpu.memory_space<vmem>>, vector<16x128xf32>,
    %c0_i32_8 = arith.constant 0 : i32
    %9 = arith.cmpi eq, %arg2, %c0_i32_8 : i32
    %10 = arith.extui %9 : i1 to i32
    %c0_i32_9 = arith.constant 0 : i32
    %11 = arith.cmpi ne, %10, %c0_i32_9 : i32
    scf.if %11 {
      %c0_10 = arith.constant 0 : index
      %c0_11 = arith.constant 0 : index
      %12 = vector.load %arg7[%c0_10, %c0_11] : memref<16x128xf32, #tpu.memory_space<vmem>>, vector<16x128xf32>
      %c0_12 = arith.constant 0 : index
      %c0_13 = arith.constant 0 : index
      %13 = vector.load %arg5[%c0_12, %c0_13] : memref<1x128xf32, #tpu.memory_space<vmem>>, vector<1x128xf32>
      %14 = vector.broadcast %13 : vector<1x128xf32> to vector<16x128xf32>
      %15 = arith.addf %12, %14 : vector<16x128xf32>
      %cst_14 = arith.constant 0.000000e+00 : f32
      %16 = vector.broadcast %cst_14 : f32 to vector<16x128xf32>
      %17 = arith.maximumf %15, %16 : vector<16x128xf32>
      %18 = arith.truncf %17 : vector<16x128xf32> to vector<16x128xbf16>
      %c0_15 = arith.constant 0 : index
      %c0_16 = arith.constant 0 : index
      %19 = vector.load %arg6[%c0_15, %c0_16] : memref<16x128xbf16, #tpu.memory_space<vmem>>, vector<16x128xbf16>
      tpu.vector_store %arg6[%c0_15, %c0_16], %18 {strides = array<i32>} : memref<16x128xbf16, #tpu.memory_space<vmem>>, vector<16x128xbf16>,
    } else {
    }
    return
  }
  func.func @transform_0(%arg0: i32, %arg1: i32, %arg2: i32) -> (i32, i32) {
    %c0_i32 = arith.constant 0 : i32
    return %arg0, %arg2 : i32, i32
  }
  func.func @transform_1(%arg0: i32, %arg1: i32, %arg2: i32) -> (i32, i32) {
    %c0_i32 = arith.constant 0 : i32
    return %arg2, %arg1 : i32, i32
  }
  func.func @transform_2(%arg0: i32, %arg1: i32, %arg2: i32) -> (i32, i32) {
    %c0_i32 = arith.constant 0 : i32
    %c0_i32_0 = arith.constant 0 : i32
    return %c0_i32, %arg1 : i32, i32
  }
  func.func @transform_3(%arg0: i32, %arg1: i32, %arg2: i32) -> (i32, i32) {
    %c0_i32 = arith.constant 0 : i32
    return %arg0, %arg1 : i32, i32
  }
}

module attributes {stable_mosaic.version = 11 : i64} {
  func.func @_aspp_proj_kernel(%arg0: i32, %arg1: memref<32x128xbf16, #tpu.memory_space<vmem>>, %arg2: memref<32x128xbf16, #tpu.memory_space<vmem>>, %arg3: memref<32x128xbf16, #tpu.memory_space<vmem>>, %arg4: memref<32x128xbf16, #tpu.memory_space<vmem>>, %arg5: memref<128x128xbf16, #tpu.memory_space<vmem>>, %arg6: memref<128x128xbf16, #tpu.memory_space<vmem>>, %arg7: memref<128x128xbf16, #tpu.memory_space<vmem>>, %arg8: memref<128x128xbf16, #tpu.memory_space<vmem>>, %arg9: memref<1x128xf32, #tpu.memory_space<vmem>>, %arg10: memref<32x128xbf16, #tpu.memory_space<vmem>>) attributes {dimension_semantics = [#tpu.dimension_semantics<parallel>], iteration_bounds = array<i64: 1>, scalar_prefetch = 0 : i64, scratch_operands = 0 : i64, tpu.core_type = #tpu.core_type<tc>, window_params = [{transform_indices = @transform_0, window_bounds = array<i64: 32, 128>}, {transform_indices = @transform_1, window_bounds = array<i64: 32, 128>}, {transform_indices = @transform_2, window_bounds = array<i64: 32, 128>}, {transform_indices = @transform_3, window_bounds = array<i64: 32, 128>}, {pipeline_mode = #tpu.pipeline_mode<synchronous>, transform_indices = @transform_4, window_bounds = array<i64: 128, 128>}, {pipeline_mode = #tpu.pipeline_mode<synchronous>, transform_indices = @transform_5, window_bounds = array<i64: 128, 128>}, {pipeline_mode = #tpu.pipeline_mode<synchronous>, transform_indices = @transform_6, window_bounds = array<i64: 128, 128>}, {pipeline_mode = #tpu.pipeline_mode<synchronous>, transform_indices = @transform_7, window_bounds = array<i64: 128, 128>}, {pipeline_mode = #tpu.pipeline_mode<synchronous>, transform_indices = @transform_8, window_bounds = array<i64: 1, 128>}, {transform_indices = @transform_9, window_bounds = array<i64: 32, 128>}]} {
    %c0 = arith.constant 0 : index
    %c0_0 = arith.constant 0 : index
    %0 = vector.load %arg1[%c0, %c0_0] : memref<32x128xbf16, #tpu.memory_space<vmem>>, vector<32x128xbf16>
    %c0_1 = arith.constant 0 : index
    %c0_2 = arith.constant 0 : index
    %1 = vector.load %arg5[%c0_1, %c0_2] : memref<128x128xbf16, #tpu.memory_space<vmem>>, vector<128x128xbf16>
    %cst = arith.constant dense<0.000000e+00> : vector<32x128xf32>
    %2 = tpu.matmul %0, %1, %cst {dimension_numbers = #tpu.dot_dimension_numbers<[1], [0], [0], [1], [0, 0, 1, 1], [], []>} : vector<32x128xbf16>, vector<128x128xbf16>, vector<32x128xf32> -> vector<32x128xf32>
    %c0_3 = arith.constant 0 : index
    %c0_4 = arith.constant 0 : index
    %3 = vector.load %arg2[%c0_3, %c0_4] : memref<32x128xbf16, #tpu.memory_space<vmem>>, vector<32x128xbf16>
    %c0_5 = arith.constant 0 : index
    %c0_6 = arith.constant 0 : index
    %4 = vector.load %arg6[%c0_5, %c0_6] : memref<128x128xbf16, #tpu.memory_space<vmem>>, vector<128x128xbf16>
    %cst_7 = arith.constant dense<0.000000e+00> : vector<32x128xf32>
    %5 = tpu.matmul %3, %4, %cst_7 {dimension_numbers = #tpu.dot_dimension_numbers<[1], [0], [0], [1], [0, 0, 1, 1], [], []>} : vector<32x128xbf16>, vector<128x128xbf16>, vector<32x128xf32> -> vector<32x128xf32>
    %6 = arith.addf %2, %5 : vector<32x128xf32>
    %c0_8 = arith.constant 0 : index
    %c0_9 = arith.constant 0 : index
    %7 = vector.load %arg3[%c0_8, %c0_9] : memref<32x128xbf16, #tpu.memory_space<vmem>>, vector<32x128xbf16>
    %c0_10 = arith.constant 0 : index
    %c0_11 = arith.constant 0 : index
    %8 = vector.load %arg7[%c0_10, %c0_11] : memref<128x128xbf16, #tpu.memory_space<vmem>>, vector<128x128xbf16>
    %cst_12 = arith.constant dense<0.000000e+00> : vector<32x128xf32>
    %9 = tpu.matmul %7, %8, %cst_12 {dimension_numbers = #tpu.dot_dimension_numbers<[1], [0], [0], [1], [0, 0, 1, 1], [], []>} : vector<32x128xbf16>, vector<128x128xbf16>, vector<32x128xf32> -> vector<32x128xf32>
    %10 = arith.addf %6, %9 : vector<32x128xf32>
    %c0_13 = arith.constant 0 : index
    %c0_14 = arith.constant 0 : index
    %11 = vector.load %arg4[%c0_13, %c0_14] : memref<32x128xbf16, #tpu.memory_space<vmem>>, vector<32x128xbf16>
    %c0_15 = arith.constant 0 : index
    %c0_16 = arith.constant 0 : index
    %12 = vector.load %arg8[%c0_15, %c0_16] : memref<128x128xbf16, #tpu.memory_space<vmem>>, vector<128x128xbf16>
    %cst_17 = arith.constant dense<0.000000e+00> : vector<32x128xf32>
    %13 = tpu.matmul %11, %12, %cst_17 {dimension_numbers = #tpu.dot_dimension_numbers<[1], [0], [0], [1], [0, 0, 1, 1], [], []>} : vector<32x128xbf16>, vector<128x128xbf16>, vector<32x128xf32> -> vector<32x128xf32>
    %14 = arith.addf %10, %13 : vector<32x128xf32>
    %c0_18 = arith.constant 0 : index
    %c0_19 = arith.constant 0 : index
    %15 = vector.load %arg9[%c0_18, %c0_19] : memref<1x128xf32, #tpu.memory_space<vmem>>, vector<1x128xf32>
    %16 = vector.broadcast %15 : vector<1x128xf32> to vector<32x128xf32>
    %17 = arith.addf %14, %16 : vector<32x128xf32>
    %cst_20 = arith.constant 0.000000e+00 : f32
    %18 = vector.broadcast %cst_20 : f32 to vector<32x128xf32>
    %19 = arith.maximumf %17, %18 : vector<32x128xf32>
    %20 = arith.truncf %19 : vector<32x128xf32> to vector<32x128xbf16>
    %c0_21 = arith.constant 0 : index
    %c0_22 = arith.constant 0 : index
    %21 = vector.load %arg10[%c0_21, %c0_22] : memref<32x128xbf16, #tpu.memory_space<vmem>>, vector<32x128xbf16>
    tpu.vector_store %arg10[%c0_21, %c0_22], %20 {strides = array<i32>} : memref<32x128xbf16, #tpu.memory_space<vmem>>, vector<32x128xbf16>,
    return
  }
  func.func @transform_0(%arg0: i32) -> (i32, i32) {
    %c0_i32 = arith.constant 0 : i32
    %c0_i32_0 = arith.constant 0 : i32
    return %arg0, %c0_i32 : i32, i32
  }
  func.func @transform_1(%arg0: i32) -> (i32, i32) {
    %c0_i32 = arith.constant 0 : i32
    %c0_i32_0 = arith.constant 0 : i32
    return %arg0, %c0_i32 : i32, i32
  }
  func.func @transform_2(%arg0: i32) -> (i32, i32) {
    %c0_i32 = arith.constant 0 : i32
    %c0_i32_0 = arith.constant 0 : i32
    return %arg0, %c0_i32 : i32, i32
  }
  func.func @transform_3(%arg0: i32) -> (i32, i32) {
    %c0_i32 = arith.constant 0 : i32
    %c0_i32_0 = arith.constant 0 : i32
    return %arg0, %c0_i32 : i32, i32
  }
  func.func @transform_4(%arg0: i32) -> (i32, i32) {
    %c0_i32 = arith.constant 0 : i32
    %c0_i32_0 = arith.constant 0 : i32
    %c0_i32_1 = arith.constant 0 : i32
    return %c0_i32, %c0_i32_0 : i32, i32
  }
  func.func @transform_5(%arg0: i32) -> (i32, i32) {
    %c0_i32 = arith.constant 0 : i32
    %c0_i32_0 = arith.constant 0 : i32
    %c0_i32_1 = arith.constant 0 : i32
    return %c0_i32, %c0_i32_0 : i32, i32
  }
  func.func @transform_6(%arg0: i32) -> (i32, i32) {
    %c0_i32 = arith.constant 0 : i32
    %c0_i32_0 = arith.constant 0 : i32
    %c0_i32_1 = arith.constant 0 : i32
    return %c0_i32, %c0_i32_0 : i32, i32
  }
  func.func @transform_7(%arg0: i32) -> (i32, i32) {
    %c0_i32 = arith.constant 0 : i32
    %c0_i32_0 = arith.constant 0 : i32
    %c0_i32_1 = arith.constant 0 : i32
    return %c0_i32, %c0_i32_0 : i32, i32
  }
  func.func @transform_8(%arg0: i32) -> (i32, i32) {
    %c0_i32 = arith.constant 0 : i32
    %c0_i32_0 = arith.constant 0 : i32
    %c0_i32_1 = arith.constant 0 : i32
    return %c0_i32, %c0_i32_0 : i32, i32
  }
  func.func @transform_9(%arg0: i32) -> (i32, i32) {
    %c0_i32 = arith.constant 0 : i32
    %c0_i32_0 = arith.constant 0 : i32
    return %arg0, %c0_i32 : i32, i32
  }
}

module attributes {stable_mosaic.version = 11 : i64} {
  func.func @_mm_bias_act_kernel(%arg0: i32, %arg1: i32, %arg2: i32, %arg3: memref<32x128xbf16, #tpu.memory_space<vmem>>, %arg4: memref<128x128xbf16, #tpu.memory_space<vmem>>, %arg5: memref<1x128xf32, #tpu.memory_space<vmem>>, %arg6: memref<32x128xf32, #tpu.memory_space<vmem>>, %arg7: memref<32x128xf32, #tpu.memory_space<vmem>>) attributes {dimension_semantics = [#tpu.dimension_semantics<parallel>, #tpu.dimension_semantics<parallel>, #tpu.dimension_semantics<arbitrary>], iteration_bounds = array<i64: 1, 1, 1>, scalar_prefetch = 0 : i64, scratch_operands = 1 : i64, tpu.core_type = #tpu.core_type<tc>, window_params = [{transform_indices = @transform_0, window_bounds = array<i64: 32, 128>}, {transform_indices = @transform_1, window_bounds = array<i64: 128, 128>}, {transform_indices = @transform_2, window_bounds = array<i64: 1, 128>}, {transform_indices = @transform_3, window_bounds = array<i64: 32, 128>}]} {
    %c0_i32 = arith.constant 0 : i32
    %0 = arith.cmpi eq, %arg2, %c0_i32 : i32
    %1 = arith.extui %0 : i1 to i32
    %c0_i32_0 = arith.constant 0 : i32
    %2 = arith.cmpi ne, %1, %c0_i32_0 : i32
    scf.if %2 {
      %cst_10 = arith.constant 0.000000e+00 : f32
      %12 = vector.broadcast %cst_10 : f32 to vector<32x128xf32>
      %c0_11 = arith.constant 0 : index
      %c0_12 = arith.constant 0 : index
      %13 = vector.load %arg7[%c0_11, %c0_12] : memref<32x128xf32, #tpu.memory_space<vmem>>, vector<32x128xf32>
      tpu.vector_store %arg7[%c0_11, %c0_12], %12 {strides = array<i32>} : memref<32x128xf32, #tpu.memory_space<vmem>>, vector<32x128xf32>,
    } else {
    }
    %c0 = arith.constant 0 : index
    %c0_1 = arith.constant 0 : index
    %3 = vector.load %arg7[%c0, %c0_1] : memref<32x128xf32, #tpu.memory_space<vmem>>, vector<32x128xf32>
    %c0_2 = arith.constant 0 : index
    %c0_3 = arith.constant 0 : index
    %4 = vector.load %arg3[%c0_2, %c0_3] : memref<32x128xbf16, #tpu.memory_space<vmem>>, vector<32x128xbf16>
    %c0_4 = arith.constant 0 : index
    %c0_5 = arith.constant 0 : index
    %5 = vector.load %arg4[%c0_4, %c0_5] : memref<128x128xbf16, #tpu.memory_space<vmem>>, vector<128x128xbf16>
    %cst = arith.constant dense<0.000000e+00> : vector<32x128xf32>
    %6 = tpu.matmul %4, %5, %cst {dimension_numbers = #tpu.dot_dimension_numbers<[1], [0], [0], [1], [0, 0, 1, 1], [], []>} : vector<32x128xbf16>, vector<128x128xbf16>, vector<32x128xf32> -> vector<32x128xf32>
    %7 = arith.addf %3, %6 : vector<32x128xf32>
    %c0_6 = arith.constant 0 : index
    %c0_7 = arith.constant 0 : index
    %8 = vector.load %arg7[%c0_6, %c0_7] : memref<32x128xf32, #tpu.memory_space<vmem>>, vector<32x128xf32>
    tpu.vector_store %arg7[%c0_6, %c0_7], %7 {strides = array<i32>} : memref<32x128xf32, #tpu.memory_space<vmem>>, vector<32x128xf32>,
    %c0_i32_8 = arith.constant 0 : i32
    %9 = arith.cmpi eq, %arg2, %c0_i32_8 : i32
    %10 = arith.extui %9 : i1 to i32
    %c0_i32_9 = arith.constant 0 : i32
    %11 = arith.cmpi ne, %10, %c0_i32_9 : i32
    scf.if %11 {
      %c0_10 = arith.constant 0 : index
      %c0_11 = arith.constant 0 : index
      %12 = vector.load %arg7[%c0_10, %c0_11] : memref<32x128xf32, #tpu.memory_space<vmem>>, vector<32x128xf32>
      %c0_12 = arith.constant 0 : index
      %c0_13 = arith.constant 0 : index
      %13 = vector.load %arg5[%c0_12, %c0_13] : memref<1x128xf32, #tpu.memory_space<vmem>>, vector<1x128xf32>
      %14 = vector.broadcast %13 : vector<1x128xf32> to vector<32x128xf32>
      %15 = arith.addf %12, %14 : vector<32x128xf32>
      %c0_14 = arith.constant 0 : index
      %c0_15 = arith.constant 0 : index
      %16 = vector.load %arg6[%c0_14, %c0_15] : memref<32x128xf32, #tpu.memory_space<vmem>>, vector<32x128xf32>
      tpu.vector_store %arg6[%c0_14, %c0_15], %15 {strides = array<i32>} : memref<32x128xf32, #tpu.memory_space<vmem>>, vector<32x128xf32>,
    } else {
    }
    return
  }
  func.func @transform_0(%arg0: i32, %arg1: i32, %arg2: i32) -> (i32, i32) {
    %c0_i32 = arith.constant 0 : i32
    return %arg0, %arg2 : i32, i32
  }
  func.func @transform_1(%arg0: i32, %arg1: i32, %arg2: i32) -> (i32, i32) {
    %c0_i32 = arith.constant 0 : i32
    return %arg2, %arg1 : i32, i32
  }
  func.func @transform_2(%arg0: i32, %arg1: i32, %arg2: i32) -> (i32, i32) {
    %c0_i32 = arith.constant 0 : i32
    %c0_i32_0 = arith.constant 0 : i32
    return %c0_i32, %arg1 : i32, i32
  }
  func.func @transform_3(%arg0: i32, %arg1: i32, %arg2: i32) -> (i32, i32) {
    %c0_i32 = arith.constant 0 : i32
    return %arg0, %arg1 : i32, i32
  }
}

module attributes {stable_mosaic.version = 11 : i64} {
  func.func @_mm_bias_act_kernel(%arg0: i32, %arg1: i32, %arg2: i32, %arg3: memref<176x128xbf16, #tpu.memory_space<vmem>>, %arg4: memref<128x128xbf16, #tpu.memory_space<vmem>>, %arg5: memref<1x128xf32, #tpu.memory_space<vmem>>, %arg6: memref<176x128xf32, #tpu.memory_space<vmem>>, %arg7: memref<176x128xf32, #tpu.memory_space<vmem>>) attributes {dimension_semantics = [#tpu.dimension_semantics<parallel>, #tpu.dimension_semantics<parallel>, #tpu.dimension_semantics<arbitrary>], iteration_bounds = array<i64: 1, 1, 1>, scalar_prefetch = 0 : i64, scratch_operands = 1 : i64, tpu.core_type = #tpu.core_type<tc>, window_params = [{transform_indices = @transform_0, window_bounds = array<i64: 176, 128>}, {transform_indices = @transform_1, window_bounds = array<i64: 128, 128>}, {transform_indices = @transform_2, window_bounds = array<i64: 1, 128>}, {transform_indices = @transform_3, window_bounds = array<i64: 176, 128>}]} {
    %c0_i32 = arith.constant 0 : i32
    %0 = arith.cmpi eq, %arg2, %c0_i32 : i32
    %1 = arith.extui %0 : i1 to i32
    %c0_i32_0 = arith.constant 0 : i32
    %2 = arith.cmpi ne, %1, %c0_i32_0 : i32
    scf.if %2 {
      %cst_10 = arith.constant 0.000000e+00 : f32
      %12 = vector.broadcast %cst_10 : f32 to vector<176x128xf32>
      %c0_11 = arith.constant 0 : index
      %c0_12 = arith.constant 0 : index
      %13 = vector.load %arg7[%c0_11, %c0_12] : memref<176x128xf32, #tpu.memory_space<vmem>>, vector<176x128xf32>
      tpu.vector_store %arg7[%c0_11, %c0_12], %12 {strides = array<i32>} : memref<176x128xf32, #tpu.memory_space<vmem>>, vector<176x128xf32>,
    } else {
    }
    %c0 = arith.constant 0 : index
    %c0_1 = arith.constant 0 : index
    %3 = vector.load %arg7[%c0, %c0_1] : memref<176x128xf32, #tpu.memory_space<vmem>>, vector<176x128xf32>
    %c0_2 = arith.constant 0 : index
    %c0_3 = arith.constant 0 : index
    %4 = vector.load %arg3[%c0_2, %c0_3] : memref<176x128xbf16, #tpu.memory_space<vmem>>, vector<176x128xbf16>
    %c0_4 = arith.constant 0 : index
    %c0_5 = arith.constant 0 : index
    %5 = vector.load %arg4[%c0_4, %c0_5] : memref<128x128xbf16, #tpu.memory_space<vmem>>, vector<128x128xbf16>
    %cst = arith.constant dense<0.000000e+00> : vector<176x128xf32>
    %6 = tpu.matmul %4, %5, %cst {dimension_numbers = #tpu.dot_dimension_numbers<[1], [0], [0], [1], [0, 0, 1, 1], [], []>} : vector<176x128xbf16>, vector<128x128xbf16>, vector<176x128xf32> -> vector<176x128xf32>
    %7 = arith.addf %3, %6 : vector<176x128xf32>
    %c0_6 = arith.constant 0 : index
    %c0_7 = arith.constant 0 : index
    %8 = vector.load %arg7[%c0_6, %c0_7] : memref<176x128xf32, #tpu.memory_space<vmem>>, vector<176x128xf32>
    tpu.vector_store %arg7[%c0_6, %c0_7], %7 {strides = array<i32>} : memref<176x128xf32, #tpu.memory_space<vmem>>, vector<176x128xf32>,
    %c0_i32_8 = arith.constant 0 : i32
    %9 = arith.cmpi eq, %arg2, %c0_i32_8 : i32
    %10 = arith.extui %9 : i1 to i32
    %c0_i32_9 = arith.constant 0 : i32
    %11 = arith.cmpi ne, %10, %c0_i32_9 : i32
    scf.if %11 {
      %c0_10 = arith.constant 0 : index
      %c0_11 = arith.constant 0 : index
      %12 = vector.load %arg7[%c0_10, %c0_11] : memref<176x128xf32, #tpu.memory_space<vmem>>, vector<176x128xf32>
      %c0_12 = arith.constant 0 : index
      %c0_13 = arith.constant 0 : index
      %13 = vector.load %arg5[%c0_12, %c0_13] : memref<1x128xf32, #tpu.memory_space<vmem>>, vector<1x128xf32>
      %14 = vector.broadcast %13 : vector<1x128xf32> to vector<176x128xf32>
      %15 = arith.addf %12, %14 : vector<176x128xf32>
      %c0_14 = arith.constant 0 : index
      %c0_15 = arith.constant 0 : index
      %16 = vector.load %arg6[%c0_14, %c0_15] : memref<176x128xf32, #tpu.memory_space<vmem>>, vector<176x128xf32>
      tpu.vector_store %arg6[%c0_14, %c0_15], %15 {strides = array<i32>} : memref<176x128xf32, #tpu.memory_space<vmem>>, vector<176x128xf32>,
    } else {
    }
    return
  }
  func.func @transform_0(%arg0: i32, %arg1: i32, %arg2: i32) -> (i32, i32) {
    %c0_i32 = arith.constant 0 : i32
    return %arg0, %arg2 : i32, i32
  }
  func.func @transform_1(%arg0: i32, %arg1: i32, %arg2: i32) -> (i32, i32) {
    %c0_i32 = arith.constant 0 : i32
    return %arg2, %arg1 : i32, i32
  }
  func.func @transform_2(%arg0: i32, %arg1: i32, %arg2: i32) -> (i32, i32) {
    %c0_i32 = arith.constant 0 : i32
    %c0_i32_0 = arith.constant 0 : i32
    return %c0_i32, %arg1 : i32, i32
  }
  func.func @transform_3(%arg0: i32, %arg1: i32, %arg2: i32) -> (i32, i32) {
    %c0_i32 = arith.constant 0 : i32
    return %arg0, %arg1 : i32, i32
  }
}

module attributes {stable_mosaic.version = 11 : i64} {
  func.func @_mm_bias_act_kernel(%arg0: i32, %arg1: i32, %arg2: i32, %arg3: memref<256x128xbf16, #tpu.memory_space<vmem>>, %arg4: memref<128x128xbf16, #tpu.memory_space<vmem>>, %arg5: memref<1x128xf32, #tpu.memory_space<vmem>>, %arg6: memref<256x128xf32, #tpu.memory_space<vmem>>, %arg7: memref<256x128xf32, #tpu.memory_space<vmem>>) attributes {dimension_semantics = [#tpu.dimension_semantics<parallel>, #tpu.dimension_semantics<parallel>, #tpu.dimension_semantics<arbitrary>], iteration_bounds = array<i64: 3, 1, 1>, scalar_prefetch = 0 : i64, scratch_operands = 1 : i64, tpu.core_type = #tpu.core_type<tc>, window_params = [{transform_indices = @transform_0, window_bounds = array<i64: 256, 128>}, {transform_indices = @transform_1, window_bounds = array<i64: 128, 128>}, {transform_indices = @transform_2, window_bounds = array<i64: 1, 128>}, {transform_indices = @transform_3, window_bounds = array<i64: 256, 128>}]} {
    %c0_i32 = arith.constant 0 : i32
    %0 = arith.cmpi eq, %arg2, %c0_i32 : i32
    %1 = arith.extui %0 : i1 to i32
    %c0_i32_0 = arith.constant 0 : i32
    %2 = arith.cmpi ne, %1, %c0_i32_0 : i32
    scf.if %2 {
      %cst_10 = arith.constant 0.000000e+00 : f32
      %12 = vector.broadcast %cst_10 : f32 to vector<256x128xf32>
      %c0_11 = arith.constant 0 : index
      %c0_12 = arith.constant 0 : index
      %13 = vector.load %arg7[%c0_11, %c0_12] : memref<256x128xf32, #tpu.memory_space<vmem>>, vector<256x128xf32>
      tpu.vector_store %arg7[%c0_11, %c0_12], %12 {strides = array<i32>} : memref<256x128xf32, #tpu.memory_space<vmem>>, vector<256x128xf32>,
    } else {
    }
    %c0 = arith.constant 0 : index
    %c0_1 = arith.constant 0 : index
    %3 = vector.load %arg7[%c0, %c0_1] : memref<256x128xf32, #tpu.memory_space<vmem>>, vector<256x128xf32>
    %c0_2 = arith.constant 0 : index
    %c0_3 = arith.constant 0 : index
    %4 = vector.load %arg3[%c0_2, %c0_3] : memref<256x128xbf16, #tpu.memory_space<vmem>>, vector<256x128xbf16>
    %c0_4 = arith.constant 0 : index
    %c0_5 = arith.constant 0 : index
    %5 = vector.load %arg4[%c0_4, %c0_5] : memref<128x128xbf16, #tpu.memory_space<vmem>>, vector<128x128xbf16>
    %cst = arith.constant dense<0.000000e+00> : vector<256x128xf32>
    %6 = tpu.matmul %4, %5, %cst {dimension_numbers = #tpu.dot_dimension_numbers<[1], [0], [0], [1], [0, 0, 1, 1], [], []>} : vector<256x128xbf16>, vector<128x128xbf16>, vector<256x128xf32> -> vector<256x128xf32>
    %7 = arith.addf %3, %6 : vector<256x128xf32>
    %c0_6 = arith.constant 0 : index
    %c0_7 = arith.constant 0 : index
    %8 = vector.load %arg7[%c0_6, %c0_7] : memref<256x128xf32, #tpu.memory_space<vmem>>, vector<256x128xf32>
    tpu.vector_store %arg7[%c0_6, %c0_7], %7 {strides = array<i32>} : memref<256x128xf32, #tpu.memory_space<vmem>>, vector<256x128xf32>,
    %c0_i32_8 = arith.constant 0 : i32
    %9 = arith.cmpi eq, %arg2, %c0_i32_8 : i32
    %10 = arith.extui %9 : i1 to i32
    %c0_i32_9 = arith.constant 0 : i32
    %11 = arith.cmpi ne, %10, %c0_i32_9 : i32
    scf.if %11 {
      %c0_10 = arith.constant 0 : index
      %c0_11 = arith.constant 0 : index
      %12 = vector.load %arg7[%c0_10, %c0_11] : memref<256x128xf32, #tpu.memory_space<vmem>>, vector<256x128xf32>
      %c0_12 = arith.constant 0 : index
      %c0_13 = arith.constant 0 : index
      %13 = vector.load %arg5[%c0_12, %c0_13] : memref<1x128xf32, #tpu.memory_space<vmem>>, vector<1x128xf32>
      %14 = vector.broadcast %13 : vector<1x128xf32> to vector<256x128xf32>
      %15 = arith.addf %12, %14 : vector<256x128xf32>
      %c0_14 = arith.constant 0 : index
      %c0_15 = arith.constant 0 : index
      %16 = vector.load %arg6[%c0_14, %c0_15] : memref<256x128xf32, #tpu.memory_space<vmem>>, vector<256x128xf32>
      tpu.vector_store %arg6[%c0_14, %c0_15], %15 {strides = array<i32>} : memref<256x128xf32, #tpu.memory_space<vmem>>, vector<256x128xf32>,
    } else {
    }
    return
  }
  func.func @transform_0(%arg0: i32, %arg1: i32, %arg2: i32) -> (i32, i32) {
    %c0_i32 = arith.constant 0 : i32
    return %arg0, %arg2 : i32, i32
  }
  func.func @transform_1(%arg0: i32, %arg1: i32, %arg2: i32) -> (i32, i32) {
    %c0_i32 = arith.constant 0 : i32
    return %arg2, %arg1 : i32, i32
  }
  func.func @transform_2(%arg0: i32, %arg1: i32, %arg2: i32) -> (i32, i32) {
    %c0_i32 = arith.constant 0 : i32
    %c0_i32_0 = arith.constant 0 : i32
    return %c0_i32, %arg1 : i32, i32
  }
  func.func @transform_3(%arg0: i32, %arg1: i32, %arg2: i32) -> (i32, i32) {
    %c0_i32 = arith.constant 0 : i32
    return %arg0, %arg1 : i32, i32
  }
}

</mosaic_0001>

<bundles_post_ra>
// kernel: deeplabv3_forward.11
= control target key start
LH: loop header
LB: loop body
LE: loop exit
PB: predicated region body
PF: predicated region fallthrough
CT: control target
= control target key end

     0   :  { %s721_s1 = inlined_call_operand.vmem [shape: bf16[128,128], index: 1, kind: input, shape index: {}]   ;;  %s722_s0 = inlined_call_operand.vmem [shape: bf16[128,128], index: 0, kind: input, shape index: {}]   ;;  %s723_s2 = inlined_call_operand.vmem [shape: f32[1,128], index: 2, kind: input, shape index: {}]   ;;  %s724_s3 = inlined_call_operand.vmem [shape: bf16[128,128], index: 3, kind: output, shape index: {}]  }
   0x1   :  { %v610_v0 = vld [vmem:[%s721_s1 + $0x38] sm:$0xff]   ;;  %v611_v1 = vld [vmem:[%s721_s1 + $0x30] sm:$0xff]   ;;  %v612_v2 = vld [vmem:[%s721_s1 + $0x28] sm:$0xff]  }
   0x2   :  { %562 = vmatprep.subr.bf16.mxu0 %v610_v0  ;;  %594 = vmatprep.subr.bf16.mxu1 %v610_v0  ;;  %v613_v3 = vld [vmem:[%s721_s1 + $0x20] sm:$0xff]   ;;  %v614_v6 = vld [vmem:[%s721_s1 + $0x18] sm:$0xff]   ;;  %v615_v7 = vld [vmem:[%s721_s1 + $0x10] sm:$0xff]  }
   0x3   :  { %563 = vmatpush3.bf16.msra.mxu0 %v610_v0  ;;  %602 = vmatpush3.bf16.msra.mxu1 %v610_v0  ;;  %v618_v4 = vld [vmem:[%s722_s0] sm:$0xff]   ;;  %v616_v8 = vld [vmem:[%s721_s1 + $0x8] sm:$0xff]   ;;  %v622_v12 = vld [vmem:[%s722_s0 + $0x10] sm:$0xff]  }
   0x4   :  { %564 = vmatprep.subr.bf16.mxu0 %v611_v1  ;;  %595 = vmatprep.subr.bf16.mxu1 %v611_v1  ;;  %v619_v5 = vld [vmem:[%s722_s0 + $0x20] sm:$0xff]   ;;  %v620_v10 = vld [vmem:[%s722_s0 + $0x8] sm:$0xff]   ;;  %v623_v13 = vld [vmem:[%s722_s0 + $0x30] sm:$0xff]  }
   0x5   :  { %578 = vmatprep.mubr.bf16.mxu0 %v618_v4  ;;  %586 = vmatprep.mubr.bf16.mxu1 %v619_v5  ;;  %v617_v9 = vld [vmem:[%s721_s1] sm:$0xff]   ;;  %v621_v11 = vld [vmem:[%s722_s0 + $0x28] sm:$0xff]   ;;  %v624_v14 = vld [vmem:[%s722_s0 + $0x18] sm:$0xff]  }
   0x6   :  { %v625_v15 = vld [vmem:[%s722_s0 + $0x38] sm:$0xff]   ;;  %v466_v16 = vld [vmem:[%s723_s2] ss:$0 sm:$0xff] }
   0x7   :  { %565 = vmatpush3.bf16.msra.mxu0 %v611_v1  ;;  %603 = vmatpush3.bf16.msra.mxu1 %v611_v1 }
   0x8   :  { %566 = vmatprep.subr.bf16.mxu0 %v612_v2  ;;  %596 = vmatprep.subr.bf16.mxu1 %v612_v2 }
   0xb   :  { %567 = vmatpush3.bf16.msra.mxu0 %v612_v2  ;;  %604 = vmatpush3.bf16.msra.mxu1 %v612_v2 }
   0xc   :  { %568 = vmatprep.subr.bf16.mxu0 %v613_v3  ;;  %597 = vmatprep.subr.bf16.mxu1 %v613_v3 }
   0xf   :  { %569 = vmatpush3.bf16.msra.mxu0 %v613_v3  ;;  %605 = vmatpush3.bf16.msra.mxu1 %v613_v3 }
  0x10   :  { %570 = vmatprep.subr.bf16.mxu0 %v614_v6  ;;  %598 = vmatprep.subr.bf16.mxu1 %v614_v6 }
  0x13   :  { %571 = vmatpush3.bf16.msra.mxu0 %v614_v6  ;;  %606 = vmatpush3.bf16.msra.mxu1 %v614_v6 }
  0x14   :  { %572 = vmatprep.subr.bf16.mxu0 %v615_v7  ;;  %599 = vmatprep.subr.bf16.mxu1 %v615_v7 }
  0x17   :  { %573 = vmatpush3.bf16.msra.mxu0 %v615_v7  ;;  %607 = vmatpush3.bf16.msra.mxu1 %v615_v7 }
  0x18   :  { %574 = vmatprep.subr.bf16.mxu0 %v616_v8  ;;  %600 = vmatprep.subr.bf16.mxu1 %v616_v8 }
  0x1b   :  { %575 = vmatpush3.bf16.msra.mxu0 %v616_v8  ;;  %608 = vmatpush3.bf16.msra.mxu1 %v616_v8 }
  0x1c   :  { %576 = vmatprep.subr.bf16.mxu0 %v617_v9  ;;  %601 = vmatprep.subr.bf16.mxu1 %v617_v9 }
  0x1f   :  { %577 = vmatpush3.bf16.msra.mxu0 %v617_v9  ;;  %609 = vmatpush3.bf16.msra.mxu1 %v617_v9 }
  0x22   :  { %579 = vmatmul.mubr.bf16.vlgmr.msra.gmra.mxu0 %v620_v10  ;;  %587 = vmatmul.mubr.bf16.vlgmr.msra.gmra.mxu1 %v621_v11 }
  0x23   :  { %582 = vmatprep.mubr.bf16.mxu0 %v622_v12  ;;  %590 = vmatprep.mubr.bf16.mxu1 %v623_v13 }
  0x2a   :  { %583 = vmatmul.mubr.bf16.gmra.mxu0 %v624_v14  ;;  %591 = vmatmul.mubr.bf16.gmra.mxu1 %v625_v15 }
  0xe2   :  { %v580_v17 = vpop.f32.mrf.mxu0  ;;  %v588_v18 = vpop.f32.mrf.mxu1 }
  0xe3   :  { %v336_v19 = vadd.f32 %v580_v17, %v466_v16  ;;  %v344_v20 = vadd.f32 %v588_v18, %v466_v16 }
  0xe4   :  { %v213_v21 = vpop.f32.mrf.mxu0  ;;  %v245_v22 = vpop.f32.mrf.mxu1 }
  0xe5   :  { %v334_v23 = vadd.f32 %v466_v16, %v213_v21  ;;  %v342_v24 = vadd.f32 %v466_v16, %v245_v22  ;;  %v352_v29 = vmax.f32 %v336_v19, 0.0  ;;  %v360_v30 = vmax.f32 %v344_v20, 0.0 }
  0xe6   :  { %v581_v25 = vpop.f32.mrf.mxu0  ;;  %v589_v26 = vpop.f32.mrf.mxu1 }
  0xe7   :  { %v337_v27 = vadd.f32 %v581_v25, %v466_v16  ;;  %v345_v28 = vadd.f32 %v589_v26, %v466_v16  ;;  %v350_v37 = vmax.f32 %v334_v23, 0.0  ;;  %v358_v38 = vmax.f32 %v342_v24, 0.0 }
  0xe8   :  { %v216_v31 = vpop.f32.mrf.mxu0  ;;  %v248_v32 = vpop.f32.mrf.mxu1 }
  0xe9   :  { %v353_v33 = vmax.f32 %v337_v27, 0.0  ;;  %v361_v34 = vmax.f32 %v345_v28, 0.0  ;;  %v335_v35 = vadd.f32 %v466_v16, %v216_v31  ;;  %v343_v36 = vadd.f32 %v466_v16, %v248_v32 }
  0xea   :  { %v584_v39 = vpop.f32.mrf.mxu0  ;;  %v592_v40 = vpop.f32.mrf.mxu1 }
  0xeb   :  { %v507_v41 = vpack.c.bf16 %v353_v33, %v352_v29  ;;  %v527_v42 = vpack.c.bf16 %v361_v34, %v360_v30  ;;  %v351_v43 = vmax.f32 %v335_v35, 0.0  ;;  %v359_v44 = vmax.f32 %v343_v36, 0.0 }
  0xec   :  { %v340_v45 = vadd.f32 %v584_v39, %v466_v16  ;;  %v348_v46 = vadd.f32 %v592_v40, %v466_v16  ;;  %v229_v47 = vpop.f32.mrf.mxu0  ;;  %v261_v48 = vpop.f32.mrf.mxu1 }
  0xed   :  { %539 = vst [vmem:[%s724_s3 + $0x8] sm:$0xff] %v507_v41   ;;  %543 = vst [vmem:[%s724_s3 + $0x28] sm:$0xff] %v527_v42   ;;  %v502_v49 = vpack.c.bf16 %v351_v43, %v350_v37  ;;  %v522_v50 = vpack.c.bf16 %v359_v44, %v358_v38  ;;  %v338_v51 = vadd.f32 %v466_v16, %v229_v47 }
  0xee   :  { %v346_v52 = vadd.f32 %v466_v16, %v261_v48  ;;  %v585_v53 = vpop.f32.mrf.mxu0  ;;  %v593_v54 = vpop.f32.mrf.mxu1  ;;  %v356_v57 = vmax.f32 %v340_v45, 0.0  ;;  %v364_v58 = vmax.f32 %v348_v46, 0.0 }
  0xef   :  { %503 = vst [vmem:[%s724_s3] sm:$0xff] %v502_v49   ;;  %542 = vst [vmem:[%s724_s3 + $0x20] sm:$0xff] %v522_v50   ;;  %v341_v55 = vadd.f32 %v585_v53, %v466_v16  ;;  %v349_v56 = vadd.f32 %v593_v54, %v466_v16  ;;  %v354_v1 = vmax.f32 %v338_v51, 0.0 }
  0xf0   :  { %v232_v59 = vpop.f32.mrf.mxu0  ;;  %v264_v60 = vpop.f32.mrf.mxu1  ;;  %v362_v2 = vmax.f32 %v346_v52, 0.0 }
  0xf1   :  { %v357_v61 = vmax.f32 %v341_v55, 0.0  ;;  %v365_v62 = vmax.f32 %v349_v56, 0.0  ;;  %v339_v63 = vadd.f32 %v466_v16, %v232_v59  ;;  %v347_v0 = vadd.f32 %v466_v16, %v264_v60 }
  0xf3   :  { %v517_v3 = vpack.c.bf16 %v357_v61, %v356_v57  ;;  %v537_v4 = vpack.c.bf16 %v365_v62, %v364_v58  ;;  %v355_v5 = vmax.f32 %v339_v63, 0.0  ;;  %v363_v6 = vmax.f32 %v347_v0, 0.0 }
  0xf5   :  { %541 = vst [vmem:[%s724_s3 + $0x18] sm:$0xff] %v517_v3   ;;  %545 = vst [vmem:[%s724_s3 + $0x38] sm:$0xff] %v537_v4   ;;  %v512_v7 = vpack.c.bf16 %v355_v5, %v354_v1  ;;  %v532_v8 = vpack.c.bf16 %v363_v6, %v362_v2 }
  0xf7   :  { %540 = vst [vmem:[%s724_s3 + $0x10] sm:$0xff] %v512_v7   ;;  %544 = vst [vmem:[%s724_s3 + $0x30] sm:$0xff] %v532_v8  }

// kernel: deeplabv3_forward.12
= control target key start
LH: loop header
LB: loop body
LE: loop exit
PB: predicated region body
PF: predicated region fallthrough
CT: control target
= control target key end

     0   :  { %s1072_s12 = smov 0   ;;  %s1074_s13 = smov 0   ;;  %s1182_s0 = inlined_call_operand.vmem [shape: bf16[32,1152], index: 0, kind: input, shape index: {}]   ;;  %s1183_s1 = inlined_call_operand.vmem [shape: bf16[1152,128], index: 1, kind: input, shape index: {}]   ;;  %s1184_s2 = inlined_call_operand.vmem [shape: f32[1,128], index: 2, kind: input, shape index: {}]   ;;  %s1185_s3 = inlined_call_operand.vmem [shape: bf16[32,128], index: 3, kind: output, shape index: {}]  }
   0x1   :  { %s1076_s14 = smov 0   ;;  %s1078_s15 = smov 0  }
   0x2   :  { %s1080_s16 = smov 0  }
   0x3 LB: > { %s25_s17 = sadd.s32 1, %s1045_s15  ;;  %p48_p1 = scmp.ne.s32.totalorder %s1037_s13, %s1033_s12  ;;  %s1049_s16 = sphi %s1080_s16, %s13_s16   ;;  %s1045_s15 = sphi %s1078_s15, %s1189_s15   ;;  %s1041_s14 = sphi %s1076_s14, %s1188_s14   ;;  %s1037_s13 = sphi %s1074_s13, %s1187_s13   ;;  %s1033_s12 = sphi %s1072_s12, %s1186_s12  }
   0x4   : > { %p26_p0 = scmp.ge.s32.totalorder %s25_s17, 3  ;;  %p49_p2 = scmp.eq.s32.totalorder %s1049_s16, 0 }
   0x5   : > { %s41_s19 = sadd.s32 1, %s1037_s13  ;;  %p809_p5 = scmp.ge.s32.totalorder %s1049_s16, 3 }
   0x6   : > { %s1191_s17 = smov (%p26_p0, %s25_s17), 0  ;;  %p50_p3 = por %p49_p2, %p48_p1 }
   0x7   : > { %s37_s18 = ssub.s32 %s1045_s15, %s1191_s17  ;;  %162 = sbr.rel (%p809_p5) target bundleno = 21 (0x15), region = 20 }
   0x8   : > { %p39_p4 = scmp.eq.s32.totalorder %s37_s18, 0 }
   0xa   : > { %s1107_s20 = scalar_select %p39_p4, %s1037_s13, %s41_s19  }
   0xc   : > { %165 = sbr.rel (!%p50_p3) target bundleno = 21 (0x15), region = 24  ;;  %s167_s21 = sand.u32 (%p50_p3), 1, %s1037_s13  }
   0xd   : > { %s862_s22 = smul.u32 (%p50_p3), 12, %s1045_s15 }
   0xe   : > { %s936_s23 = smul.u32 (%p50_p3), 48, %s167_s21 }
   0xf   : > { %s175_s26 = scalar_lea.vmem (%p50_p3), %s1182_s0, %s862_s22 }
  0x10   : > { %v190_v0 = vld [vmem:[%s175_s26] sm:$0xff] (%p50_p3)  ;;  %v194_v2 = vld [vmem:[%s175_s26 + $0x48] sm:$0xff] (%p50_p3)  ;;  %s169_s27 = scalar_lea.vmem (%p50_p3), [#allocation3], %s936_s23  ;;  %v815_v6 = vld [vmem:[%s175_s26 + $0x50] sm:$0xf] (%p50_p3) }
  0x11   : > { %v192_v1 = vld [vmem:[%s175_s26 + $0x24] sm:$0xff]  ;;  %191 = vst [vmem:[%s169_s27] sm:$0xff] %v190_v0  ;;  %195 = vst [vmem:[%s169_s27 + $0x18] sm:$0xff] %v194_v2  ;;  %v196_v3 = vld [vmem:[%s175_s26 + $0x6c] sm:$0xff] }
  0x12   : > { %193 = vst [vmem:[%s169_s27 + $0xc] sm:$0xff] %v192_v1  ;;  %v811_v4 = vld [vmem:[%s175_s26 + $0x8] sm:$0xf]  ;;  %v813_v5 = vld [vmem:[%s175_s26 + $0x2c] sm:$0xf]  ;;  %197 = vst [vmem:[%s169_s27 + $0x24] sm:$0xff] %v196_v3 }
  0x13   : > { %812 = vst [vmem:[%s169_s27 + $0x8] sm:$0xf] %v811_v4  ;;  %814 = vst [vmem:[%s169_s27 + $0x14] sm:$0xf] %v813_v5  ;;  %v817_v7 = vld [vmem:[%s175_s26 + $0x74] sm:$0xf] }
  0x14   : > { %816 = vst [vmem:[%s169_s27 + $0x20] sm:$0xf] %v815_v6  ;;  %818 = vst [vmem:[%s169_s27 + $0x2c] sm:$0xf] %v817_v7 }
  0x15 PF: > { %p819_p6 = scmp.ge.s32.totalorder %s1049_s16, 1  ;;  %p230_p7 = scmp.lt.s32.totalorder %s1049_s16, 4 }
  0x17   : > { %p231_p8 = pnand %p819_p6, %p230_p7 }
  0x18   : > { %s237_s28 = sand.u32 (!%p231_p8), 1, %s1033_s12   ;;  %s276_s29 = smul.u32 (!%p231_p8), 48, %s1041_s14 }
  0x19   : > { %234 = sbr.rel (%p231_p8) target bundleno = 299 (0x12b), region = 54  ;;  %p821_p10 = scmp.ne.s32.totalorder (!%p231_p8), %s1041_s14, 0 }
  0x1a   : > { %s937_s30 = smul.u32 (!%p231_p8), 48, %s237_s28  ;;  %p277_p9 = scmp.lt.s32.totalorder (!%p231_p8), %s276_s29, 143 }
  0x1c   : > { %s1124_s8 = scalar_lea.vmem (!%p231_p8), [#allocation3], %s937_s30 }
  0x1e   : > { %s1193_s29 = smov (!%p277_p9, %s276_s29), 143  ;;  %301 = sbr.rel (%p821_p10) target bundleno = 38 (0x26), region = 62 }
  0x1f   : > { %s820_s4 = sshll.u32 %s1193_s29, 2 }
  0x20   : > { %s1122_s7 = scalar_lea.vmem %s1183_s1, %s820_s4 }
  0x23   : > { %v1051_v8 = vmov 0.0  }
  0x24   : > { %302 = vst [vmem:[#allocation2 + $0x10] sm:$0xff] %v1051_v8  ;;  %303 = vst [vmem:[#allocation2] sm:$0xff] %v1051_v8 }
  0x25   : > { %304 = vst [vmem:[#allocation2 + $0x18] sm:$0xff] %v1051_v8  ;;  %305 = vst [vmem:[#allocation2 + $0x8] sm:$0xff] %v1051_v8 }
  0x26 PF: > { %v979_v9 = vld [vmem:[%s1122_s7 + $0x78] sm:$0xff]   ;;  %v982_v12 = vld [vmem:[%s1122_s7 + $0x70] sm:$0xff]   ;;  %v985_v15 = vld [vmem:[%s1122_s7 + $0x68] sm:$0xff]   ;;  %p852_p11 = scmp.ne.s32.totalorder %s1041_s14, 2 }
  0x27   : > { %v980_v10 = vld [vmem:[%s1122_s7 + $0x38] sm:$0xff]   ;;  %878 = vmatprep.subr.bf16.mxu0 %v979_v9  ;;  %v983_v13 = vld [vmem:[%s1122_s7 + $0x30] sm:$0xff]   ;;  %v986_v16 = vld [vmem:[%s1122_s7 + $0x28] sm:$0xff]  }
  0x28   : > { %v981_v11 = vld [vmem:[%s1122_s7 + $0xb8] sm:$0xff]   ;;  %879 = vmatpush3.bf16.msra.mxu0 %v980_v10  ;;  %v984_v14 = vld [vmem:[%s1122_s7 + $0xb0] sm:$0xff]   ;;  %v987_v17 = vld [vmem:[%s1122_s7 + $0xa8] sm:$0xff]  }
  0x29   : > { %916 = vmatprep.subr.bf16.mxu1 %v981_v11  ;;  %880 = vmatprep.subr.bf16.mxu0 %v982_v12  ;;  %v988_v18 = vld [vmem:[%s1122_s7 + $0x60] sm:$0xff]   ;;  %v991_v21 = vld [vmem:[%s1122_s7 + $0x58] sm:$0xff]   ;;  %v994_v24 = vld [vmem:[%s1122_s7 + $0x50] sm:$0xff]  }
  0x2a   : > { %917 = vmatpush3.bf16.msra.mxu1 %v981_v11  ;;  %v989_v19 = vld [vmem:[%s1122_s7 + $0x20] sm:$0xff]   ;;  %v993_v22 = vld [vmem:[%s1122_s7 + $0x98] sm:$0xff]   ;;  %v996_v25 = vld [vmem:[%s1122_s7 + $0x90] sm:$0xff]  }
  0x2b   : > { %918 = vmatprep.subr.bf16.mxu1 %v984_v14  ;;  %v990_v20 = vld [vmem:[%s1122_s7 + $0xa0] sm:$0xff]   ;;  %v992_v23 = vld [vmem:[%s1122_s7 + $0x18] sm:$0xff]   ;;  %v995_v26 = vld [vmem:[%s1122_s7 + $0x10] sm:$0xff]  }
  0x2c   : > { %881 = vmatpush3.bf16.msra.mxu0 %v983_v13  ;;  %v997_v27 = vld [vmem:[%s1122_s7 + $0x48] sm:$0xff]   ;;  %v1000_v30 = vld [vmem:[%s1122_s7 + $0x40] sm:$0xff]   ;;  %v306_v44 = vld [vmem:[#allocation2 + $0x10] sm:$0xff] }
  0x2d   : > { %882 = vmatprep.subr.bf16.mxu0 %v985_v15  ;;  %v998_v28 = vld [vmem:[%s1122_s7 + $0x8] sm:$0xff]   ;;  %v1002_v31 = vld [vmem:[%s1122_s7 + $0x80] sm:$0xff]   ;;  %v308_v58 = vld [vmem:[#allocation2 + $0x18] sm:$0xff] }
  0x2e   : > { %919 = vmatpush3.bf16.msra.mxu1 %v984_v14  ;;  %v999_v29 = vld [vmem:[%s1122_s7 + $0x88] sm:$0xff]   ;;  %v1005_v32 = vld [vmem:[%s1124_s8 + $0x4] ss:$12 sps:$4 sm:$0xff]  }
  0x2f   : > { %920 = vmatprep.subr.bf16.mxu1 %v987_v17  ;;  %v1006_v33 = vld [vmem:[%s1124_s8 + $0x8] ss:$12 sps:$4 sm:$0xff]   ;;  %574 = vmatprep.mubr.bf16.mxu0 %v1005_v32  ;;  %v1003_v35 = vld [vmem:[%s1124_s8] ss:$12 sps:$4 sm:$0xff]   ;;  %v1010_v38 = vld [vmem:[%s1124_s8 + $0x18] ss:$12 sps:$4 sm:$0xff]  }
  0x30   : > { %883 = vmatpush3.bf16.msra.mxu0 %v986_v16  ;;  %v1001_v34 = vld [vmem:[%s1122_s7] sm:$0xff]   ;;  %932 = vmatprep.mubr.bf16.mxu1 %v1006_v33  ;;  %v1008_v36 = vld [vmem:[%s1124_s8 + $0x1c] ss:$12 sps:$4 sm:$0xff]  }
  0x31   : > { %884 = vmatprep.subr.bf16.mxu0 %v988_v18  ;;  %v1007_v37 = vld [vmem:[%s1124_s8 + $0x20] ss:$12 sps:$4 sm:$0xff]  }
  0x32   : > { %921 = vmatpush3.bf16.msra.mxu1 %v987_v17  ;;  %v307_v52 = vld [vmem:[#allocation2] sm:$0xff]  ;;  %v309_v0 = vld [vmem:[#allocation2 + $0x8] sm:$0xff] }
  0x33   : > { %922 = vmatprep.subr.bf16.mxu1 %v990_v20 }
  0x34   : > { %885 = vmatpush3.bf16.msra.mxu0 %v989_v19 }
  0x35   : > { %886 = vmatprep.subr.bf16.mxu0 %v991_v21 }
  0x36   : > { %923 = vmatpush3.bf16.msra.mxu1 %v990_v20 }
  0x37   : > { %924 = vmatprep.subr.bf16.mxu1 %v993_v22 }
  0x38   : > { %887 = vmatpush3.bf16.msra.mxu0 %v992_v23 }
  0x39   : > { %888 = vmatprep.subr.bf16.mxu0 %v994_v24 }
  0x3a   : > { %925 = vmatpush3.bf16.msra.mxu1 %v993_v22 }
  0x3b   : > { %926 = vmatprep.subr.bf16.mxu1 %v996_v25 }
  0x3c   : > { %889 = vmatpush3.bf16.msra.mxu0 %v995_v26 }
  0x3d   : > { %890 = vmatprep.subr.bf16.mxu0 %v997_v27 }
  0x3e   : > { %927 = vmatpush3.bf16.msra.mxu1 %v996_v25 }
  0x3f   : > { %928 = vmatprep.subr.bf16.mxu1 %v999_v29 }
  0x40   : > { %891 = vmatpush3.bf16.msra.mxu0 %v998_v28 }
  0x41   : > { %892 = vmatprep.subr.bf16.mxu0 %v1000_v30 }
  0x42   : > { %929 = vmatpush3.bf16.msra.mxu1 %v999_v29 }
  0x43   : > { %930 = vmatprep.subr.bf16.mxu1 %v1002_v31 }
  0x44   : > { %893 = vmatpush3.bf16.msra.mxu0 %v1001_v34 }
  0x46   : > { %931 = vmatpush3.bf16.msra.mxu1 %v1002_v31 }
  0x47   : > { %575 = vmatmul.mubr.bf16.vlgmr.msra.gmra.mxu0 %v1003_v35 }
  0x48   : > { %582 = vmatprep.mubr.bf16.mxu0 %v1008_v36 }
  0x49   : > { %933 = vmatmul.mubr.bf16.vlgmr.msra.gmra.mxu1 %v1007_v37 }
  0x4f   : > { %583 = vmatmul.mubr.bf16.gmra.mxu0 %v1010_v38 }
 0x107   : > { %v894_v39 = vpop.f32.mrf.mxu0 }
 0x109   : > { %v895_v40 = vpop.f32.mrf.mxu0  ;;  %v934_v41 = vpop.f32.mrf.mxu1 }
 0x10a   : > { %v896_v42 = vadd.f32 %v895_v40, %v894_v39 }
 0x10b   : > { %v897_v43 = vpop.f32.mrf.mxu0  ;;  %v625_v45 = vpop.f32.mrf.mxu1 }
 0x10c   : > { %v626_v46 = vadd.f32 %v896_v42, %v625_v45 }
 0x10d   : > { %v898_v47 = vpop.f32.mrf.mxu0  ;;  %v935_v48 = vpop.f32.mrf.mxu1 }
 0x10e   : > { %v640_v49 = vadd.f32 %v626_v46, %v306_v44  ;;  %v899_v50 = vadd.f32 %v898_v47, %v897_v43 }
 0x10f   : > { %v900_v51 = vpop.f32.mrf.mxu0  ;;  %v628_v53 = vpop.f32.mrf.mxu1 }
 0x110   : > { %644 = vst [vmem:[#allocation2 + $0x10] sm:$0xff] %v640_v49  ;;  %v629_v54 = vadd.f32 %v899_v50, %v628_v53 }
 0x111   : > { %v901_v55 = vpop.f32.mrf.mxu0 }
 0x112   : > { %v641_v56 = vadd.f32 %v629_v54, %v307_v52  ;;  %v902_v57 = vadd.f32 %v901_v55, %v900_v51 }
 0x113   : > { %v903_v59 = vpop.f32.mrf.mxu0 }
 0x114   : > { %645 = vst [vmem:[#allocation2] sm:$0xff] %v641_v56  ;;  %v634_v60 = vadd.f32 %v934_v41, %v902_v57 }
 0x115   : > { %v904_v61 = vpop.f32.mrf.mxu0 }
 0x116   : > { %v642_v62 = vadd.f32 %v634_v60, %v308_v58  ;;  %v905_v63 = vadd.f32 %v904_v61, %v903_v59 }
 0x118   : > { %646 = vst [vmem:[#allocation2 + $0x18] sm:$0xff] %v642_v62  ;;  %v637_v1 = vadd.f32 %v935_v48, %v905_v63  ;;  %651 = sbr.rel (%p852_p11) target bundleno = 299 (0x12b), region = 66 }
 0x11a   : > { %v643_v2 = vadd.f32 %v637_v1, %v309_v0 }
 0x11c   : > { %647 = vst [vmem:[#allocation2 + $0x8] sm:$0xff] %v643_v2 }
 0x11d   : > { %v652_v3 = vld [vmem:[#allocation2 + $0x10] sm:$0xff]  ;;  %v653_v4 = vld [vmem:[#allocation2] sm:$0xff] }
 0x11e   : > { %v853_v5 = vld [vmem:[%s1184_s2] ss:$0 sm:$0xff] }
 0x11f   : > { %v663_v6 = vadd.f32 %v853_v5, %v652_v3  ;;  %v664_v7 = vadd.f32 %v853_v5, %v653_v4  ;;  %v654_v8 = vld [vmem:[#allocation2 + $0x18] sm:$0xff] }
 0x120   : > { %v665_v10 = vadd.f32 %v853_v5, %v654_v8 }
 0x121   : > { %v667_v12 = vmax.f32 %v663_v6, 0.0  ;;  %v668_v13 = vmax.f32 %v664_v7, 0.0 }
 0x122   : > { %v669_v14 = vmax.f32 %v665_v10, 0.0 }
 0x123   : > { %v655_v9 = vld [vmem:[#allocation2 + $0x8] sm:$0xff]  ;;  %v870_v16 = vpack.c.bf16 %v668_v13, %v667_v12 }
 0x124   : > { %v666_v11 = vadd.f32 %v853_v5, %v655_v9 }
 0x125   : > { %871 = vst [vmem:[%s1185_s3] sm:$0xff] %v870_v16  }
 0x126   : > { %v670_v15 = vmax.f32 %v666_v11, 0.0 }
 0x128   : > { %v875_v17 = vpack.c.bf16 %v670_v15, %v669_v14 }
 0x12a   : > { %877 = vst [vmem:[%s1185_s3 + $0x8] sm:$0xff] %v875_v17  }
 0x12b PF: > { %s13_s16 = sadd.s32 1, %s1049_s16   ;;  %s1186_s12 = smov %s1037_s13 }
 0x12c   : > { %p10_p12 = scmp.ge.s32.totalorder %s13_s16, 5   ;;  %s1187_s13 = smov %s1107_s20 }
 0x12d   : > { %s1188_s14 = smov %s1045_s15  ;;  %s1189_s15 = smov %s1191_s17 }
 0x12e   :  { %12 = sbr.rel (!%p10_p12) target bundleno = 3 (0x3), region = 113 }

// kernel: deeplabv3_forward.16
= control target key start
LH: loop header
LB: loop body
LE: loop exit
PB: predicated region body
PF: predicated region fallthrough
CT: control target
= control target key end

     0   :  { %v229_v0 = vmov 0.0   ;;  %vm230_vm0 = vmmov 0   ;;  %s284_s1 = inlined_call_operand.vmem [shape: bf16[128,128], index: 1, kind: input, shape index: {}]   ;;  %s285_s0 = inlined_call_operand.vmem [shape: bf16[16,128], index: 0, kind: input, shape index: {}]   ;;  %s286_s2 = inlined_call_operand.vmem [shape: f32[1,128], index: 2, kind: input, shape index: {}]   ;;  %s287_s3 = inlined_call_operand.vmem [shape: bf16[16,128], index: 3, kind: output, shape index: {}]  }
   0x1   :  { %198 = vmatprep.subr.bf16.mxu0 %v229_v0  ;;  %v220_v1 = vld [vmem:[%s284_s1 + $0x38] sm:$0xff]   ;;  %214 = vmatprep.mubr.msk.bf16.mxu0 %vm230_vm0, %v229_v0  ;;  %v221_v2 = vld [vmem:[%s284_s1 + $0x30] sm:$0xff]   ;;  %v222_v3 = vld [vmem:[%s284_s1 + $0x28] sm:$0xff]  }
   0x2   :  { %199 = vmatpush3.bf16.msra.mxu0 %v220_v1  ;;  %v223_v4 = vld [vmem:[%s284_s1 + $0x20] sm:$0xff]   ;;  %v224_v5 = vld [vmem:[%s284_s1 + $0x18] sm:$0xff]   ;;  %v225_v6 = vld [vmem:[%s284_s1 + $0x10] sm:$0xff]  }
   0x3   :  { %200 = vmatprep.subr.bf16.mxu0 %v229_v0  ;;  %v226_v7 = vld [vmem:[%s284_s1 + $0x8] sm:$0xff]   ;;  %v227_v8 = vld [vmem:[%s284_s1] sm:$0xff]  }
   0x4   :  { %v228_v9 = vld [vmem:[%s285_s0] sm:$0xff]  }
   0x5   :  { %v179_v11 = vld [vmem:[%s286_s2] ss:$0 sm:$0xff] }
   0x6   :  { %201 = vmatpush3.bf16.msra.mxu0 %v221_v2 }
   0x7   :  { %202 = vmatprep.subr.bf16.mxu0 %v229_v0 }
   0xa   :  { %203 = vmatpush3.bf16.msra.mxu0 %v222_v3 }
   0xb   :  { %204 = vmatprep.subr.bf16.mxu0 %v229_v0 }
   0xe   :  { %205 = vmatpush3.bf16.msra.mxu0 %v223_v4 }
   0xf   :  { %206 = vmatprep.subr.bf16.mxu0 %v229_v0 }
  0x12   :  { %207 = vmatpush3.bf16.msra.mxu0 %v224_v5 }
  0x13   :  { %208 = vmatprep.subr.bf16.mxu0 %v229_v0 }
  0x16   :  { %209 = vmatpush3.bf16.msra.mxu0 %v225_v6 }
  0x17   :  { %210 = vmatprep.subr.bf16.mxu0 %v229_v0 }
  0x1a   :  { %211 = vmatpush3.bf16.msra.mxu0 %v226_v7 }
  0x1b   :  { %212 = vmatprep.subr.bf16.mxu0 %v229_v0 }
  0x1e   :  { %213 = vmatpush3.bf16.msra.mxu0 %v227_v8 }
  0x21   :  { %215 = vmatmul.mubr.bf16.vlgmr.msra.gmra.mxu0 %v228_v9 }
  0xe1   :  { %v129_v10 = vpop.f32.mrf.mxu0 }
  0xe2   :  { %v152_v13 = vadd.f32 %v179_v11, %v129_v10 }
  0xe3   :  { %v216_v12 = vpop.f32.mrf.mxu0 }
  0xe4   :  { %v154_v17 = vmax.f32 %v152_v13, 0.0 }
  0xe5   :  { %v132_v14 = vpop.f32.mrf.mxu0 }
  0xe6   :  { %v153_v15 = vadd.f32 %v179_v11, %v132_v14 }
  0xe7   :  { %v217_v16 = vpop.f32.mrf.mxu0 }
  0xe8   :  { %v155_v18 = vmax.f32 %v153_v15, 0.0 }
  0xea   :  { %v187_v19 = vpack.c.bf16 %v155_v18, %v154_v17 }
  0xec   :  { %188 = vst [vmem:[%s287_s3] sm:$0xff] %v187_v19  }

// kernel: deeplabv3_forward.13
= control target key start
LH: loop header
LB: loop body
LE: loop exit
PB: predicated region body
PF: predicated region fallthrough
CT: control target
= control target key end

     0   :  { %s339_s1 = inlined_call_operand.vmem [shape: bf16[128,128], index: 1, kind: input, shape index: {}]   ;;  %s340_s0 = inlined_call_operand.vmem [shape: bf16[32,128], index: 0, kind: input, shape index: {}]   ;;  %s341_s2 = inlined_call_operand.vmem [shape: f32[1,128], index: 2, kind: input, shape index: {}]   ;;  %s342_s3 = inlined_call_operand.vmem [shape: bf16[32,128], index: 3, kind: output, shape index: {}]  }
   0x1   :  { %v270_v0 = vld [vmem:[%s339_s1 + $0x38] sm:$0xff]   ;;  %v271_v1 = vld [vmem:[%s339_s1 + $0x30] sm:$0xff]   ;;  %v272_v2 = vld [vmem:[%s339_s1 + $0x28] sm:$0xff]  }
   0x2   :  { %250 = vmatprep.subr.bf16.mxu0 %v270_v0  ;;  %v273_v3 = vld [vmem:[%s339_s1 + $0x20] sm:$0xff]   ;;  %v274_v5 = vld [vmem:[%s339_s1 + $0x18] sm:$0xff]   ;;  %v275_v6 = vld [vmem:[%s339_s1 + $0x10] sm:$0xff]  }
   0x3   :  { %251 = vmatpush3.bf16.msra.mxu0 %v270_v0  ;;  %v278_v4 = vld [vmem:[%s340_s0] sm:$0xff]   ;;  %v276_v7 = vld [vmem:[%s339_s1 + $0x8] sm:$0xff]  }
   0x4   :  { %252 = vmatprep.subr.bf16.mxu0 %v271_v1  ;;  %266 = vmatprep.mubr.bf16.mxu0 %v278_v4  ;;  %v277_v8 = vld [vmem:[%s339_s1] sm:$0xff]   ;;  %v279_v9 = vld [vmem:[%s340_s0 + $0x8] sm:$0xff]  }
   0x5   :  { %v220_v11 = vld [vmem:[%s341_s2] ss:$0 sm:$0xff] }
   0x7   :  { %253 = vmatpush3.bf16.msra.mxu0 %v271_v1 }
   0x8   :  { %254 = vmatprep.subr.bf16.mxu0 %v272_v2 }
   0xb   :  { %255 = vmatpush3.bf16.msra.mxu0 %v272_v2 }
   0xc   :  { %256 = vmatprep.subr.bf16.mxu0 %v273_v3 }
   0xf   :  { %257 = vmatpush3.bf16.msra.mxu0 %v273_v3 }
  0x10   :  { %258 = vmatprep.subr.bf16.mxu0 %v274_v5 }
  0x13   :  { %259 = vmatpush3.bf16.msra.mxu0 %v274_v5 }
  0x14   :  { %260 = vmatprep.subr.bf16.mxu0 %v275_v6 }
  0x17   :  { %261 = vmatpush3.bf16.msra.mxu0 %v275_v6 }
  0x18   :  { %262 = vmatprep.subr.bf16.mxu0 %v276_v7 }
  0x1b   :  { %263 = vmatpush3.bf16.msra.mxu0 %v276_v7 }
  0x1c   :  { %264 = vmatprep.subr.bf16.mxu0 %v277_v8 }
  0x1f   :  { %265 = vmatpush3.bf16.msra.mxu0 %v277_v8 }
  0x22   :  { %267 = vmatmul.mubr.bf16.vlgmr.msra.gmra.mxu0 %v279_v9 }
  0xe2   :  { %v268_v10 = vpop.f32.mrf.mxu0 }
  0xe3   :  { %v180_v13 = vadd.f32 %v268_v10, %v220_v11 }
  0xe4   :  { %v141_v12 = vpop.f32.mrf.mxu0 }
  0xe5   :  { %v178_v15 = vadd.f32 %v220_v11, %v141_v12  ;;  %v184_v18 = vmax.f32 %v180_v13, 0.0 }
  0xe6   :  { %v269_v14 = vpop.f32.mrf.mxu0 }
  0xe7   :  { %v181_v16 = vadd.f32 %v269_v14, %v220_v11  ;;  %v182_v21 = vmax.f32 %v178_v15, 0.0 }
  0xe8   :  { %v144_v17 = vpop.f32.mrf.mxu0 }
  0xe9   :  { %v185_v19 = vmax.f32 %v181_v16, 0.0  ;;  %v179_v20 = vadd.f32 %v220_v11, %v144_v17 }
  0xeb   :  { %v237_v22 = vpack.c.bf16 %v185_v19, %v184_v18  ;;  %v183_v23 = vmax.f32 %v179_v20, 0.0 }
  0xed   :  { %239 = vst [vmem:[%s342_s3 + $0x8] sm:$0xff] %v237_v22   ;;  %v232_v24 = vpack.c.bf16 %v183_v23, %v182_v21 }
  0xef   :  { %233 = vst [vmem:[%s342_s3] sm:$0xff] %v232_v24  }

// kernel: deeplabv3_forward.19
= control target key start
LH: loop header
LB: loop body
LE: loop exit
PB: predicated region body
PF: predicated region fallthrough
CT: control target
= control target key end

     0   :  { %s306_s1 = inlined_call_operand.vmem [shape: bf16[128,128], index: 1, kind: input, shape index: {}]   ;;  %s307_s0 = inlined_call_operand.vmem [shape: bf16[32,128], index: 0, kind: input, shape index: {}]   ;;  %s308_s2 = inlined_call_operand.vmem [shape: f32[1,128], index: 2, kind: input, shape index: {}]   ;;  %s309_s3 = inlined_call_operand.vmem [shape: f32[32,128], index: 3, kind: output, shape index: {}]  }
   0x1   :  { %v231_v0 = vld [vmem:[%s306_s1 + $0x38] sm:$0xff]   ;;  %v232_v1 = vld [vmem:[%s306_s1 + $0x30] sm:$0xff]   ;;  %v233_v2 = vld [vmem:[%s306_s1 + $0x28] sm:$0xff]  }
   0x2   :  { %211 = vmatprep.subr.bf16.mxu0 %v231_v0  ;;  %v234_v3 = vld [vmem:[%s306_s1 + $0x20] sm:$0xff]   ;;  %v235_v5 = vld [vmem:[%s306_s1 + $0x18] sm:$0xff]   ;;  %v236_v6 = vld [vmem:[%s306_s1 + $0x10] sm:$0xff]  }
   0x3   :  { %212 = vmatpush3.bf16.msra.mxu0 %v231_v0  ;;  %v239_v4 = vld [vmem:[%s307_s0] sm:$0xff]   ;;  %v237_v7 = vld [vmem:[%s306_s1 + $0x8] sm:$0xff]  }
   0x4   :  { %213 = vmatprep.subr.bf16.mxu0 %v232_v1  ;;  %227 = vmatprep.mubr.bf16.mxu0 %v239_v4  ;;  %v238_v8 = vld [vmem:[%s306_s1] sm:$0xff]   ;;  %v240_v9 = vld [vmem:[%s307_s0 + $0x8] sm:$0xff]  }
   0x5   :  { %v200_v10 = vld [vmem:[%s308_s2] ss:$0 sm:$0xff] }
   0x7   :  { %214 = vmatpush3.bf16.msra.mxu0 %v232_v1 }
   0x8   :  { %215 = vmatprep.subr.bf16.mxu0 %v233_v2 }
   0xb   :  { %216 = vmatpush3.bf16.msra.mxu0 %v233_v2 }
   0xc   :  { %217 = vmatprep.subr.bf16.mxu0 %v234_v3 }
   0xf   :  { %218 = vmatpush3.bf16.msra.mxu0 %v234_v3 }
  0x10   :  { %219 = vmatprep.subr.bf16.mxu0 %v235_v5 }
  0x13   :  { %220 = vmatpush3.bf16.msra.mxu0 %v235_v5 }
  0x14   :  { %221 = vmatprep.subr.bf16.mxu0 %v236_v6 }
  0x17   :  { %222 = vmatpush3.bf16.msra.mxu0 %v236_v6 }
  0x18   :  { %223 = vmatprep.subr.bf16.mxu0 %v237_v7 }
  0x1b   :  { %224 = vmatpush3.bf16.msra.mxu0 %v237_v7 }
  0x1c   :  { %225 = vmatprep.subr.bf16.mxu0 %v238_v8 }
  0x1f   :  { %226 = vmatpush3.bf16.msra.mxu0 %v238_v8 }
  0x22   :  { %228 = vmatmul.mubr.bf16.vlgmr.msra.gmra.mxu0 %v240_v9 }
  0xe2   :  { %v229_v11 = vpop.f32.mrf.mxu0 }
  0xe3   :  { %v180_v12 = vadd.f32 %v229_v11, %v200_v10 }
  0xe4   :  { %v141_v13 = vpop.f32.mrf.mxu0 }
  0xe5   :  { %184 = vst [vmem:[%s309_s3 + $0x10] sm:$0xff] %v180_v12  ;;  %v178_v14 = vadd.f32 %v200_v10, %v141_v13 }
  0xe6   :  { %v230_v15 = vpop.f32.mrf.mxu0 }
  0xe7   :  { %182 = vst [vmem:[%s309_s3] sm:$0xff] %v178_v14  ;;  %v181_v16 = vadd.f32 %v230_v15, %v200_v10 }
  0xe8   :  { %v144_v17 = vpop.f32.mrf.mxu0 }
  0xe9   :  { %185 = vst [vmem:[%s309_s3 + $0x18] sm:$0xff] %v181_v16  ;;  %v179_v18 = vadd.f32 %v200_v10, %v144_v17 }
  0xeb   :  { %183 = vst [vmem:[%s309_s3 + $0x8] sm:$0xff] %v179_v18 }

// kernel: deeplabv3_forward.17
= control target key start
LH: loop header
LB: loop body
LE: loop exit
PB: predicated region body
PF: predicated region fallthrough
CT: control target
= control target key end

     0   :  { %s995_s5 = inlined_call_operand.vmem [shape: bf16[128,128], index: 5, kind: input, shape index: {}]   ;;  %s996_s4 = inlined_call_operand.vmem [shape: bf16[128,128], index: 4, kind: input, shape index: {}]   ;;  %s997_s1 = inlined_call_operand.vmem [shape: bf16[32,128], index: 1, kind: input, shape index: {}]   ;;  %s998_s0 = inlined_call_operand.vmem [shape: bf16[32,128], index: 0, kind: input, shape index: {}]   ;;  %s999_s6 = inlined_call_operand.vmem [shape: bf16[128,128], index: 6, kind: input, shape index: {}]   ;;  %s1000_s7 = inlined_call_operand.vmem [shape: bf16[128,128], index: 7, kind: input, shape index: {}]   ;;  %s1001_s2 = inlined_call_operand.vmem [shape: bf16[32,128], index: 2, kind: input, shape index: {}]   ;;  %s1002_s3 = inlined_call_operand.vmem [shape: bf16[32,128], index: 3, kind: input, shape index: {}]   ;;  %s1003_s8 = inlined_call_operand.vmem [shape: f32[1,128], index: 8, kind: input, shape index: {}]   ;;  %s1004_s9 = inlined_call_operand.vmem [shape: bf16[32,128], index: 9, kind: output, shape index: {}]  }
   0x1   :  { %v776_v0 = vld [vmem:[%s995_s5 + $0x38] sm:$0xff]   ;;  %v778_v2 = vld [vmem:[%s995_s5 + $0x30] sm:$0xff]   ;;  %v780_v4 = vld [vmem:[%s995_s5 + $0x28] sm:$0xff]  }
   0x2   :  { %v777_v1 = vld [vmem:[%s996_s4 + $0x38] sm:$0xff]   ;;  %696 = vmatprep.subr.bf16.mxu0 %v776_v0  ;;  %v779_v3 = vld [vmem:[%s996_s4 + $0x30] sm:$0xff]   ;;  %v781_v5 = vld [vmem:[%s996_s4 + $0x28] sm:$0xff]  }
   0x3   :  { %716 = vmatprep.subr.bf16.mxu1 %v777_v1  ;;  %697 = vmatpush3.bf16.msra.mxu0 %v776_v0  ;;  %v782_v6 = vld [vmem:[%s995_s5 + $0x20] sm:$0xff]   ;;  %v784_v8 = vld [vmem:[%s995_s5 + $0x18] sm:$0xff]   ;;  %v786_v10 = vld [vmem:[%s995_s5 + $0x10] sm:$0xff]  }
   0x4   :  { %717 = vmatpush3.bf16.msra.mxu1 %v777_v1  ;;  %698 = vmatprep.subr.bf16.mxu0 %v778_v2  ;;  %v783_v7 = vld [vmem:[%s996_s4 + $0x20] sm:$0xff]   ;;  %v785_v9 = vld [vmem:[%s996_s4 + $0x18] sm:$0xff]   ;;  %v787_v11 = vld [vmem:[%s996_s4 + $0x10] sm:$0xff]  }
   0x5   :  { %718 = vmatprep.subr.bf16.mxu1 %v779_v3  ;;  %v792_v12 = vld [vmem:[%s997_s1] sm:$0xff]   ;;  %v788_v14 = vld [vmem:[%s995_s5 + $0x8] sm:$0xff]   ;;  %v796_v18 = vld [vmem:[%s999_s6 + $0x38] sm:$0xff]  }
   0x6   :  { %v793_v13 = vld [vmem:[%s998_s0] sm:$0xff]   ;;  %712 = vmatprep.mubr.bf16.mxu0 %v792_v12  ;;  %v789_v15 = vld [vmem:[%s996_s4 + $0x8] sm:$0xff]   ;;  %v797_v19 = vld [vmem:[%s1000_s7 + $0x38] sm:$0xff]  }
   0x7   :  { %699 = vmatpush3.bf16.msra.mxu0 %v778_v2  ;;  %732 = vmatprep.mubr.bf16.mxu1 %v793_v13  ;;  %v790_v16 = vld [vmem:[%s995_s5] sm:$0xff]   ;;  %v794_v20 = vld [vmem:[%s997_s1 + $0x8] sm:$0xff]   ;;  %v798_v22 = vld [vmem:[%s999_s6 + $0x30] sm:$0xff]  }
   0x8   :  { %719 = vmatpush3.bf16.msra.mxu1 %v779_v3  ;;  %700 = vmatprep.subr.bf16.mxu0 %v780_v4  ;;  %v791_v17 = vld [vmem:[%s996_s4] sm:$0xff]   ;;  %v795_v21 = vld [vmem:[%s998_s0 + $0x8] sm:$0xff]   ;;  %v799_v23 = vld [vmem:[%s1000_s7 + $0x30] sm:$0xff]  }
   0x9   :  { %720 = vmatprep.subr.bf16.mxu1 %v781_v5  ;;  %v800_v24 = vld [vmem:[%s999_s6 + $0x28] sm:$0xff]   ;;  %v812_v26 = vld [vmem:[%s1001_s2] sm:$0xff]   ;;  %v804_v30 = vld [vmem:[%s999_s6 + $0x18] sm:$0xff]  }
   0xa   :  { %v801_v25 = vld [vmem:[%s1000_s7 + $0x28] sm:$0xff]   ;;  %v813_v27 = vld [vmem:[%s1002_s3] sm:$0xff]   ;;  %v805_v31 = vld [vmem:[%s1000_s7 + $0x18] sm:$0xff]  }
   0xb   :  { %701 = vmatpush3.bf16.msra.mxu0 %v780_v4  ;;  %v802_v28 = vld [vmem:[%s999_s6 + $0x20] sm:$0xff]   ;;  %v806_v32 = vld [vmem:[%s999_s6 + $0x10] sm:$0xff]   ;;  %v808_v34 = vld [vmem:[%s999_s6 + $0x8] sm:$0xff]  }
   0xc   :  { %721 = vmatpush3.bf16.msra.mxu1 %v781_v5  ;;  %702 = vmatprep.subr.bf16.mxu0 %v782_v6  ;;  %v803_v29 = vld [vmem:[%s1000_s7 + $0x20] sm:$0xff]   ;;  %v807_v33 = vld [vmem:[%s1000_s7 + $0x10] sm:$0xff]   ;;  %v809_v35 = vld [vmem:[%s1000_s7 + $0x8] sm:$0xff]  }
   0xd   :  { %722 = vmatprep.subr.bf16.mxu1 %v783_v7  ;;  %v810_v36 = vld [vmem:[%s999_s6] sm:$0xff]   ;;  %v814_v38 = vld [vmem:[%s1001_s2 + $0x8] sm:$0xff]  }
   0xe   :  { %v811_v37 = vld [vmem:[%s1000_s7] sm:$0xff]   ;;  %v815_v39 = vld [vmem:[%s1002_s3 + $0x8] sm:$0xff]  }
   0xf   :  { %703 = vmatpush3.bf16.msra.mxu0 %v782_v6  ;;  %v636_v58 = vld [vmem:[%s1003_s8] ss:$0 sm:$0xff] }
  0x10   :  { %723 = vmatpush3.bf16.msra.mxu1 %v783_v7  ;;  %704 = vmatprep.subr.bf16.mxu0 %v784_v8 }
  0x11   :  { %724 = vmatprep.subr.bf16.mxu1 %v785_v9 }
  0x13   :  { %705 = vmatpush3.bf16.msra.mxu0 %v784_v8 }
  0x14   :  { %725 = vmatpush3.bf16.msra.mxu1 %v785_v9  ;;  %706 = vmatprep.subr.bf16.mxu0 %v786_v10 }
  0x15   :  { %726 = vmatprep.subr.bf16.mxu1 %v787_v11 }
  0x17   :  { %707 = vmatpush3.bf16.msra.mxu0 %v786_v10 }
  0x18   :  { %727 = vmatpush3.bf16.msra.mxu1 %v787_v11  ;;  %708 = vmatprep.subr.bf16.mxu0 %v788_v14 }
  0x19   :  { %728 = vmatprep.subr.bf16.mxu1 %v789_v15 }
  0x1b   :  { %709 = vmatpush3.bf16.msra.mxu0 %v788_v14 }
  0x1c   :  { %729 = vmatpush3.bf16.msra.mxu1 %v789_v15  ;;  %710 = vmatprep.subr.bf16.mxu0 %v790_v16 }
  0x1d   :  { %730 = vmatprep.subr.bf16.mxu1 %v791_v17 }
  0x1f   :  { %711 = vmatpush3.bf16.msra.mxu0 %v790_v16 }
  0x20   :  { %731 = vmatpush3.bf16.msra.mxu1 %v791_v17  ;;  %736 = vmatprep.subr.bf16.mxu0 %v796_v18 }
  0x21   :  { %756 = vmatprep.subr.bf16.mxu1 %v797_v19 }
  0x22   :  { %713 = vmatmul.mubr.bf16.vlgmr.msra.gmra.mxu0 %v794_v20 }
  0x23   :  { %733 = vmatmul.mubr.bf16.vlgmr.msra.gmra.mxu1 %v795_v21  ;;  %737 = vmatpush3.bf16.msra.mxu0 %v796_v18 }
  0x24   :  { %757 = vmatpush3.bf16.msra.mxu1 %v797_v19  ;;  %738 = vmatprep.subr.bf16.mxu0 %v798_v22 }
  0x25   :  { %758 = vmatprep.subr.bf16.mxu1 %v799_v23  ;;  %752 = vmatprep.mubr.bf16.mxu0 %v812_v26 }
  0x26   :  { %772 = vmatprep.mubr.bf16.mxu1 %v813_v27 }
  0x27   :  { %739 = vmatpush3.bf16.msra.mxu0 %v798_v22 }
  0x28   :  { %759 = vmatpush3.bf16.msra.mxu1 %v799_v23  ;;  %740 = vmatprep.subr.bf16.mxu0 %v800_v24 }
  0x29   :  { %760 = vmatprep.subr.bf16.mxu1 %v801_v25 }
  0x2b   :  { %741 = vmatpush3.bf16.msra.mxu0 %v800_v24 }
  0x2c   :  { %761 = vmatpush3.bf16.msra.mxu1 %v801_v25  ;;  %742 = vmatprep.subr.bf16.mxu0 %v802_v28 }
  0x2d   :  { %762 = vmatprep.subr.bf16.mxu1 %v803_v29 }
  0x2f   :  { %743 = vmatpush3.bf16.msra.mxu0 %v802_v28 }
  0x30   :  { %763 = vmatpush3.bf16.msra.mxu1 %v803_v29  ;;  %744 = vmatprep.subr.bf16.mxu0 %v804_v30 }
  0x31   :  { %764 = vmatprep.subr.bf16.mxu1 %v805_v31 }
  0x33   :  { %745 = vmatpush3.bf16.msra.mxu0 %v804_v30 }
  0x34   :  { %765 = vmatpush3.bf16.msra.mxu1 %v805_v31  ;;  %746 = vmatprep.subr.bf16.mxu0 %v806_v32 }
  0x35   :  { %766 = vmatprep.subr.bf16.mxu1 %v807_v33 }
  0x37   :  { %747 = vmatpush3.bf16.msra.mxu0 %v806_v32 }
  0x38   :  { %767 = vmatpush3.bf16.msra.mxu1 %v807_v33  ;;  %748 = vmatprep.subr.bf16.mxu0 %v808_v34 }
  0x39   :  { %768 = vmatprep.subr.bf16.mxu1 %v809_v35 }
  0x3b   :  { %749 = vmatpush3.bf16.msra.mxu0 %v808_v34 }
  0x3c   :  { %769 = vmatpush3.bf16.msra.mxu1 %v809_v35  ;;  %750 = vmatprep.subr.bf16.mxu0 %v810_v36 }
  0x3d   :  { %770 = vmatprep.subr.bf16.mxu1 %v811_v37 }
  0x3f   :  { %751 = vmatpush3.bf16.msra.mxu0 %v810_v36 }
  0x40   :  { %771 = vmatpush3.bf16.msra.mxu1 %v811_v37 }
  0x42   :  { %753 = vmatmul.mubr.bf16.vlgmr.msra.gmra.mxu0 %v814_v38 }
  0x43   :  { %773 = vmatmul.mubr.bf16.vlgmr.msra.gmra.mxu1 %v815_v39 }
  0xe2   :  { %v714_v40 = vpop.f32.mrf.mxu0 }
  0xe3   :  { %v734_v41 = vpop.f32.mrf.mxu1 }
  0xe4   :  { %v167_v42 = vpop.f32.mrf.mxu0  ;;  %v285_v47 = vadd.f32 %v734_v41, %v714_v40 }
  0xe5   :  { %v276_v43 = vpop.f32.mrf.mxu1 }
  0xe6   :  { %v715_v44 = vpop.f32.mrf.mxu0  ;;  %v277_v50 = vadd.f32 %v276_v43, %v167_v42 }
  0xe7   :  { %v735_v45 = vpop.f32.mrf.mxu1 }
  0xe8   :  { %v170_v46 = vpop.f32.mrf.mxu0  ;;  %v288_v54 = vadd.f32 %v735_v45, %v715_v44 }
  0xe9   :  { %v279_v48 = vpop.f32.mrf.mxu1 }
  0xea   :  { %v280_v60 = vadd.f32 %v279_v48, %v170_v46 }
 0x102   :  { %v754_v49 = vpop.f32.mrf.mxu0 }
 0x103   :  { %v422_v51 = vadd.f32 %v754_v49, %v285_v47  ;;  %v774_v52 = vpop.f32.mrf.mxu1 }
 0x104   :  { %v405_v53 = vpop.f32.mrf.mxu0 }
 0x105   :  { %v555_v55 = vadd.f32 %v774_v52, %v422_v51  ;;  %v420_v56 = vadd.f32 %v405_v53, %v277_v50  ;;  %v538_v57 = vpop.f32.mrf.mxu1 }
 0x106   :  { %v755_v59 = vpop.f32.mrf.mxu0 }
 0x107   :  { %v553_v61 = vadd.f32 %v538_v57, %v420_v56  ;;  %v423_v62 = vadd.f32 %v755_v59, %v288_v54  ;;  %v775_v63 = vpop.f32.mrf.mxu1  ;;  %v566_v1 = vadd.f32 %v636_v58, %v555_v55 }
 0x108   :  { %v408_v0 = vpop.f32.mrf.mxu0 }
 0x109   :  { %v556_v2 = vadd.f32 %v775_v63, %v423_v62  ;;  %v421_v3 = vadd.f32 %v408_v0, %v280_v60  ;;  %v541_v4 = vpop.f32.mrf.mxu1  ;;  %v564_v5 = vadd.f32 %v636_v58, %v553_v61  ;;  %v570_v8 = vmax.f32 %v566_v1, 0.0 }
 0x10b   :  { %v567_v6 = vadd.f32 %v636_v58, %v556_v2  ;;  %v554_v7 = vadd.f32 %v541_v4, %v421_v3  ;;  %v568_v11 = vmax.f32 %v564_v5, 0.0 }
 0x10d   :  { %v571_v9 = vmax.f32 %v567_v6, 0.0  ;;  %v565_v10 = vadd.f32 %v636_v58, %v554_v7 }
 0x10f   :  { %v653_v12 = vpack.c.bf16 %v571_v9, %v570_v8  ;;  %v569_v13 = vmax.f32 %v565_v10, 0.0 }
 0x111   :  { %655 = vst [vmem:[%s1004_s9 + $0x8] sm:$0xff] %v653_v12   ;;  %v648_v14 = vpack.c.bf16 %v569_v13, %v568_v11 }
 0x113   :  { %649 = vst [vmem:[%s1004_s9] sm:$0xff] %v648_v14  }

// kernel: deeplabv3_forward.20
= control target key start
LH: loop header
LB: loop body
LE: loop exit
PB: predicated region body
PF: predicated region fallthrough
CT: control target
= control target key end

     0   :  { %v596_v0 = vmov 0.0   ;;  %vm597_vm0 = vmmov 0   ;;  %s806_s1 = inlined_call_operand.vmem [shape: bf16[128,128], index: 1, kind: input, shape index: {}]   ;;  %s807_s0 = inlined_call_operand.vmem [shape: bf16[176,128], index: 0, kind: input, shape index: {}]   ;;  %s808_s2 = inlined_call_operand.vmem [shape: f32[1,128], index: 2, kind: input, shape index: {}]   ;;  %s809_s3 = inlined_call_operand.vmem [shape: f32[176,128], index: 3, kind: output, shape index: {}]  }
   0x1   :  { %499 = vmatprep.subr.bf16.mxu0 %v596_v0  ;;  %v577_v1 = vld [vmem:[%s806_s1 + $0x38] sm:$0xff]   ;;  %559 = vmatprep.subr.bf16.mxu1 %v596_v0  ;;  %v578_v2 = vld [vmem:[%s806_s1 + $0x30] sm:$0xff]   ;;  %v579_v3 = vld [vmem:[%s806_s1 + $0x28] sm:$0xff]  }
   0x2   :  { %515 = vmatprep.mubr.msk.bf16.mxu0 %vm597_vm0, %v596_v0  ;;  %539 = vmatprep.mubr.msk.bf16.mxu1 %vm597_vm0, %v596_v0  ;;  %v580_v4 = vld [vmem:[%s806_s1 + $0x20] sm:$0xff]   ;;  %v581_v5 = vld [vmem:[%s806_s1 + $0x18] sm:$0xff]   ;;  %v582_v6 = vld [vmem:[%s806_s1 + $0x10] sm:$0xff]  }
   0x3   :  { %500 = vmatpush3.bf16.msra.mxu0 %v577_v1  ;;  %567 = vmatpush3.bf16.msra.mxu1 %v577_v1  ;;  %v583_v7 = vld [vmem:[%s806_s1 + $0x8] sm:$0xff]   ;;  %v584_v8 = vld [vmem:[%s806_s1] sm:$0xff]   ;;  %v586_v10 = vld [vmem:[%s807_s0 + $0x30] sm:$0xff]  }
   0x4   :  { %501 = vmatprep.subr.bf16.mxu0 %v596_v0  ;;  %560 = vmatprep.subr.bf16.mxu1 %v596_v0  ;;  %v585_v9 = vld [vmem:[%s807_s0] sm:$0xff]   ;;  %v587_v11 = vld [vmem:[%s807_s0 + $0x8] sm:$0xff]   ;;  %v588_v12 = vld [vmem:[%s807_s0 + $0x38] sm:$0xff]  }
   0x5   :  { %v589_v13 = vld [vmem:[%s807_s0 + $0x10] sm:$0xff]   ;;  %v590_v14 = vld [vmem:[%s807_s0 + $0x40] sm:$0xff]   ;;  %v591_v15 = vld [vmem:[%s807_s0 + $0x18] sm:$0xff]  }
   0x6   :  { %v592_v16 = vld [vmem:[%s807_s0 + $0x48] sm:$0xff]   ;;  %v593_v17 = vld [vmem:[%s807_s0 + $0x20] sm:$0xff]   ;;  %v594_v18 = vld [vmem:[%s807_s0 + $0x50] sm:$0xff]  }
   0x7   :  { %502 = vmatpush3.bf16.msra.mxu0 %v578_v2  ;;  %568 = vmatpush3.bf16.msra.mxu1 %v578_v2  ;;  %v595_v19 = vld [vmem:[%s807_s0 + $0x28] sm:$0xff]   ;;  %v716_v20 = vld [vmem:[%s808_s2] ss:$0 sm:$0xff] }
   0x8   :  { %503 = vmatprep.subr.bf16.mxu0 %v596_v0  ;;  %561 = vmatprep.subr.bf16.mxu1 %v596_v0 }
   0xb   :  { %504 = vmatpush3.bf16.msra.mxu0 %v579_v3  ;;  %569 = vmatpush3.bf16.msra.mxu1 %v579_v3 }
   0xc   :  { %505 = vmatprep.subr.bf16.mxu0 %v596_v0  ;;  %562 = vmatprep.subr.bf16.mxu1 %v596_v0 }
   0xf   :  { %506 = vmatpush3.bf16.msra.mxu0 %v580_v4  ;;  %570 = vmatpush3.bf16.msra.mxu1 %v580_v4 }
  0x10   :  { %507 = vmatprep.subr.bf16.mxu0 %v596_v0  ;;  %563 = vmatprep.subr.bf16.mxu1 %v596_v0 }
  0x13   :  { %508 = vmatpush3.bf16.msra.mxu0 %v581_v5  ;;  %571 = vmatpush3.bf16.msra.mxu1 %v581_v5 }
  0x14   :  { %509 = vmatprep.subr.bf16.mxu0 %v596_v0  ;;  %564 = vmatprep.subr.bf16.mxu1 %v596_v0 }
  0x17   :  { %510 = vmatpush3.bf16.msra.mxu0 %v582_v6  ;;  %572 = vmatpush3.bf16.msra.mxu1 %v582_v6 }
  0x18   :  { %511 = vmatprep.subr.bf16.mxu0 %v596_v0  ;;  %565 = vmatprep.subr.bf16.mxu1 %v596_v0 }
  0x1b   :  { %512 = vmatpush3.bf16.msra.mxu0 %v583_v7  ;;  %573 = vmatpush3.bf16.msra.mxu1 %v583_v7 }
  0x1c   :  { %513 = vmatprep.subr.bf16.mxu0 %v596_v0  ;;  %566 = vmatprep.subr.bf16.mxu1 %v596_v0 }
  0x1f   :  { %514 = vmatpush3.bf16.msra.mxu0 %v584_v8  ;;  %574 = vmatpush3.bf16.msra.mxu1 %v584_v8 }
  0x22   :  { %516 = vmatmul.mubr.bf16.vlgmr.msra.gmra.mxu0 %v585_v9  ;;  %540 = vmatmul.mubr.bf16.vlgmr.msra.gmra.mxu1 %v586_v10 }
  0x23   :  { %519 = vmatprep.mubr.msk.bf16.mxu0 %vm597_vm0, %v596_v0  ;;  %543 = vmatprep.mubr.msk.bf16.mxu1 %vm597_vm0, %v596_v0 }
  0x2a   :  { %520 = vmatmul.mubr.bf16.gmra.mxu0 %v587_v11  ;;  %544 = vmatmul.mubr.bf16.gmra.mxu1 %v588_v12 }
  0x2b   :  { %523 = vmatprep.mubr.msk.bf16.mxu0 %vm597_vm0, %v596_v0  ;;  %547 = vmatprep.mubr.msk.bf16.mxu1 %vm597_vm0, %v596_v0 }
  0x32   :  { %524 = vmatmul.mubr.bf16.gmra.mxu0 %v589_v13  ;;  %548 = vmatmul.mubr.bf16.gmra.mxu1 %v590_v14 }
  0x33   :  { %527 = vmatprep.mubr.msk.bf16.mxu0 %vm597_vm0, %v596_v0  ;;  %551 = vmatprep.mubr.msk.bf16.mxu1 %vm597_vm0, %v596_v0 }
  0x3a   :  { %528 = vmatmul.mubr.bf16.gmra.mxu0 %v591_v15  ;;  %552 = vmatmul.mubr.bf16.gmra.mxu1 %v592_v16 }
  0x3b   :  { %531 = vmatprep.mubr.msk.bf16.mxu0 %vm597_vm0, %v596_v0  ;;  %555 = vmatprep.mubr.msk.bf16.mxu1 %vm597_vm0, %v596_v0 }
  0x42   :  { %532 = vmatmul.mubr.bf16.gmra.mxu0 %v593_v17  ;;  %556 = vmatmul.mubr.bf16.gmra.mxu1 %v594_v18 }
  0x43   :  { %535 = vmatprep.mubr.msk.bf16.mxu0 %vm597_vm0, %v596_v0 }
  0x4a   :  { %536 = vmatmul.mubr.bf16.gmra.mxu0 %v595_v19 }
  0xe2   :  { %v249_v21 = vpop.f32.mrf.mxu0  ;;  %v297_v22 = vpop.f32.mrf.mxu1 }
  0xe3   :  { %v412_v23 = vadd.f32 %v716_v20, %v249_v21  ;;  %v424_v24 = vadd.f32 %v716_v20, %v297_v22 }
  0xe4   :  { %v517_v25 = vpop.f32.mrf.mxu0  ;;  %v541_v26 = vpop.f32.mrf.mxu1 }
  0xe5   :  { %434 = vst [vmem:[%s809_s3] sm:$0xff] %v412_v23  ;;  %446 = vst [vmem:[%s809_s3 + $0x60] sm:$0xff] %v424_v24 }
  0xe6   :  { %v252_v27 = vpop.f32.mrf.mxu0  ;;  %v300_v28 = vpop.f32.mrf.mxu1 }
  0xe7   :  { %v413_v29 = vadd.f32 %v716_v20, %v252_v27  ;;  %v425_v30 = vadd.f32 %v716_v20, %v300_v28 }
  0xe8   :  { %v518_v31 = vpop.f32.mrf.mxu0  ;;  %v542_v32 = vpop.f32.mrf.mxu1 }
  0xe9   :  { %435 = vst [vmem:[%s809_s3 + $0x8] sm:$0xff] %v413_v29  ;;  %447 = vst [vmem:[%s809_s3 + $0x68] sm:$0xff] %v425_v30 }
  0xea   :  { %v257_v33 = vpop.f32.mrf.mxu0  ;;  %v305_v34 = vpop.f32.mrf.mxu1 }
  0xeb   :  { %v414_v35 = vadd.f32 %v716_v20, %v257_v33  ;;  %v426_v36 = vadd.f32 %v716_v20, %v305_v34 }
  0xec   :  { %v521_v37 = vpop.f32.mrf.mxu0  ;;  %v545_v38 = vpop.f32.mrf.mxu1 }
  0xed   :  { %436 = vst [vmem:[%s809_s3 + $0x10] sm:$0xff] %v414_v35  ;;  %448 = vst [vmem:[%s809_s3 + $0x70] sm:$0xff] %v426_v36 }
  0xee   :  { %v260_v39 = vpop.f32.mrf.mxu0  ;;  %v308_v40 = vpop.f32.mrf.mxu1 }
  0xef   :  { %v415_v41 = vadd.f32 %v716_v20, %v260_v39  ;;  %v427_v42 = vadd.f32 %v716_v20, %v308_v40 }
  0xf0   :  { %v522_v43 = vpop.f32.mrf.mxu0  ;;  %v546_v44 = vpop.f32.mrf.mxu1 }
  0xf1   :  { %437 = vst [vmem:[%s809_s3 + $0x18] sm:$0xff] %v415_v41  ;;  %449 = vst [vmem:[%s809_s3 + $0x78] sm:$0xff] %v427_v42 }
  0xf2   :  { %v265_v45 = vpop.f32.mrf.mxu0  ;;  %v313_v46 = vpop.f32.mrf.mxu1 }
  0xf3   :  { %v416_v47 = vadd.f32 %v716_v20, %v265_v45  ;;  %v428_v48 = vadd.f32 %v716_v20, %v313_v46 }
  0xf4   :  { %v525_v49 = vpop.f32.mrf.mxu0  ;;  %v549_v50 = vpop.f32.mrf.mxu1 }
  0xf5   :  { %438 = vst [vmem:[%s809_s3 + $0x20] sm:$0xff] %v416_v47  ;;  %450 = vst [vmem:[%s809_s3 + $0x80] sm:$0xff] %v428_v48 }
  0xf6   :  { %v268_v51 = vpop.f32.mrf.mxu0  ;;  %v316_v52 = vpop.f32.mrf.mxu1 }
  0xf7   :  { %v417_v53 = vadd.f32 %v716_v20, %v268_v51  ;;  %v429_v54 = vadd.f32 %v716_v20, %v316_v52 }
  0xf8   :  { %v526_v55 = vpop.f32.mrf.mxu0  ;;  %v550_v56 = vpop.f32.mrf.mxu1 }
  0xf9   :  { %439 = vst [vmem:[%s809_s3 + $0x28] sm:$0xff] %v417_v53  ;;  %451 = vst [vmem:[%s809_s3 + $0x88] sm:$0xff] %v429_v54 }
  0xfa   :  { %v273_v57 = vpop.f32.mrf.mxu0  ;;  %v321_v58 = vpop.f32.mrf.mxu1 }
  0xfb   :  { %v418_v59 = vadd.f32 %v716_v20, %v273_v57  ;;  %v430_v60 = vadd.f32 %v716_v20, %v321_v58 }
  0xfc   :  { %v529_v61 = vpop.f32.mrf.mxu0  ;;  %v553_v62 = vpop.f32.mrf.mxu1 }
  0xfd   :  { %440 = vst [vmem:[%s809_s3 + $0x30] sm:$0xff] %v418_v59  ;;  %452 = vst [vmem:[%s809_s3 + $0x90] sm:$0xff] %v430_v60 }
  0xfe   :  { %v276_v63 = vpop.f32.mrf.mxu0  ;;  %v324_v0 = vpop.f32.mrf.mxu1 }
  0xff   :  { %v419_v1 = vadd.f32 %v716_v20, %v276_v63  ;;  %v431_v2 = vadd.f32 %v716_v20, %v324_v0 }
 0x100   :  { %v530_v3 = vpop.f32.mrf.mxu0  ;;  %v554_v4 = vpop.f32.mrf.mxu1 }
 0x101   :  { %441 = vst [vmem:[%s809_s3 + $0x38] sm:$0xff] %v419_v1  ;;  %453 = vst [vmem:[%s809_s3 + $0x98] sm:$0xff] %v431_v2 }
 0x102   :  { %v281_v5 = vpop.f32.mrf.mxu0  ;;  %v329_v6 = vpop.f32.mrf.mxu1 }
 0x103   :  { %v420_v7 = vadd.f32 %v716_v20, %v281_v5  ;;  %v432_v8 = vadd.f32 %v716_v20, %v329_v6 }
 0x104   :  { %v533_v9 = vpop.f32.mrf.mxu0  ;;  %v557_v10 = vpop.f32.mrf.mxu1 }
 0x105   :  { %442 = vst [vmem:[%s809_s3 + $0x40] sm:$0xff] %v420_v7  ;;  %454 = vst [vmem:[%s809_s3 + $0xa0] sm:$0xff] %v432_v8 }
 0x106   :  { %v284_v11 = vpop.f32.mrf.mxu0  ;;  %v332_v12 = vpop.f32.mrf.mxu1 }
 0x107   :  { %v421_v13 = vadd.f32 %v716_v20, %v284_v11  ;;  %v433_v14 = vadd.f32 %v716_v20, %v332_v12 }
 0x108   :  { %v534_v15 = vpop.f32.mrf.mxu0  ;;  %v558_v16 = vpop.f32.mrf.mxu1 }
 0x109   :  { %443 = vst [vmem:[%s809_s3 + $0x48] sm:$0xff] %v421_v13  ;;  %455 = vst [vmem:[%s809_s3 + $0xa8] sm:$0xff] %v433_v14 }
 0x10a   :  { %v289_v17 = vpop.f32.mrf.mxu0 }
 0x10b   :  { %v422_v18 = vadd.f32 %v716_v20, %v289_v17 }
 0x10c   :  { %v537_v19 = vpop.f32.mrf.mxu0 }
 0x10d   :  { %444 = vst [vmem:[%s809_s3 + $0x50] sm:$0xff] %v422_v18 }
 0x10e   :  { %v292_v21 = vpop.f32.mrf.mxu0 }
 0x10f   :  { %v423_v22 = vadd.f32 %v716_v20, %v292_v21 }
 0x110   :  { %v538_v23 = vpop.f32.mrf.mxu0 }
 0x111   :  { %445 = vst [vmem:[%s809_s3 + $0x58] sm:$0xff] %v423_v22 }

// kernel: deeplabv3_forward.21
= control target key start
LH: loop header
LB: loop body
LE: loop exit
PB: predicated region body
PF: predicated region fallthrough
CT: control target
= control target key end

     0   :  { %s1180_s12 = smov 0   ;;  %s1182_s13 = smov 0   ;;  %s1330_s0 = inlined_call_operand.vmem [shape: bf16[768,128], index: 0, kind: input, shape index: {}]   ;;  %s1331_s1 = inlined_call_operand.vmem [shape: bf16[128,128], index: 1, kind: input, shape index: {}]   ;;  %s1332_s2 = inlined_call_operand.vmem [shape: f32[1,128], index: 2, kind: input, shape index: {}]   ;;  %s1333_s3 = inlined_call_operand.vmem [shape: f32[768,128], index: 3, kind: output, shape index: {}]  }
   0x1   :  { %s1184_s14 = smov 0  }
   0x2 LB: > { %s32_s15 = sadd.s32 1, %s1154_s13  ;;  %p968_p0 = scmp.ge.s32.totalorder %s1158_s14, 1  ;;  %s1158_s14 = sphi %s1184_s14, %s13_s14   ;;  %s1154_s13 = sphi %s1182_s13, %s1335_s13   ;;  %s1150_s12 = sphi %s1180_s12, %s1334_s12  }
   0x3   : > { %p34_p1 = scmp.ge.s32.totalorder %s32_s15, 3  ;;  %p188_p2 = scmp.lt.s32.totalorder %s1158_s14, 4 }
   0x5   : > { %s1337_s15 = smov (%p34_p1, %s32_s15), 0  ;;  %p189_p3 = pnand %p968_p0, %p188_p2 }
   0x6   : > { %s969_s18 = sshll.u32 (!%p189_p3), %s1150_s12, 5 }
   0x7   : > { %192 = sbr.rel (%p189_p3) target bundleno = 271 (0x10f), region = 32  ;;  %p230_p4 = scmp.lt.s32.totalorder (!%p189_p3), %s969_s18, 95 }
   0xc   : > { %v1112_v0 = vld [vmem:[%s1331_s1 + $0x38] sm:$0xff]   ;;  %v1113_v1 = vld [vmem:[%s1331_s1 + $0x30] sm:$0xff]   ;;  %s1339_s18 = smov (!%p230_p4, %s969_s18), 95  ;;  %v1114_v2 = vld [vmem:[%s1331_s1 + $0x28] sm:$0xff]  }
   0xd   : > { %1024 = vmatprep.subr.bf16.mxu0 %v1112_v0  ;;  %1072 = vmatprep.subr.bf16.mxu1 %v1112_v0  ;;  %s970_s23 = sshll.u32 %s1339_s18, 2  ;;  %v1115_v3 = vld [vmem:[%s1331_s1 + $0x20] sm:$0xff]   ;;  %v1116_v6 = vld [vmem:[%s1331_s1 + $0x18] sm:$0xff]   ;;  %v1117_v7 = vld [vmem:[%s1331_s1 + $0x10] sm:$0xff]   ;;  %s972_s10 = sshll.u32 %s1339_s18, 3 }
   0xe   : > { %1025 = vmatpush3.bf16.msra.mxu0 %v1112_v0  ;;  %1080 = vmatpush3.bf16.msra.mxu1 %v1112_v0  ;;  %s1213_s26 = scalar_lea.vmem %s1330_s0, %s970_s23  ;;  %v1118_v8 = vld [vmem:[%s1331_s1 + $0x8] sm:$0xff]   ;;  %v1119_v9 = vld [vmem:[%s1331_s1] sm:$0xff]   ;;  %s1255_s19 = scalar_lea.vmem %s1333_s3, %s972_s10 }
   0xf   : > { %1026 = vmatprep.subr.bf16.mxu0 %v1113_v1  ;;  %1073 = vmatprep.subr.bf16.mxu1 %v1113_v1  ;;  %v1120_v4 = vld [vmem:[%s1213_s26] sm:$0xff]   ;;  %v1122_v10 = vld [vmem:[%s1213_s26 + $0x8] sm:$0xff]   ;;  %v1124_v12 = vld [vmem:[%s1213_s26 + $0x10] sm:$0xff]  }
  0x10   : > { %v1121_v5 = vld [vmem:[%s1213_s26 + $0x40] sm:$0xff]   ;;  %1040 = vmatprep.mubr.bf16.mxu0 %v1120_v4  ;;  %v1123_v11 = vld [vmem:[%s1213_s26 + $0x48] sm:$0xff]   ;;  %v1125_v13 = vld [vmem:[%s1213_s26 + $0x50] sm:$0xff]  }
  0x11   : > { %1056 = vmatprep.mubr.bf16.mxu1 %v1121_v5  ;;  %v1126_v14 = vld [vmem:[%s1213_s26 + $0x18] sm:$0xff]   ;;  %v1128_v16 = vld [vmem:[%s1213_s26 + $0x20] sm:$0xff]   ;;  %v1130_v18 = vld [vmem:[%s1213_s26 + $0x28] sm:$0xff]  }
  0x12   : > { %1027 = vmatpush3.bf16.msra.mxu0 %v1113_v1  ;;  %1081 = vmatpush3.bf16.msra.mxu1 %v1113_v1  ;;  %v1127_v15 = vld [vmem:[%s1213_s26 + $0x58] sm:$0xff]   ;;  %v1129_v17 = vld [vmem:[%s1213_s26 + $0x60] sm:$0xff]   ;;  %v1131_v19 = vld [vmem:[%s1213_s26 + $0x68] sm:$0xff]  }
  0x13   : > { %1028 = vmatprep.subr.bf16.mxu0 %v1114_v2  ;;  %1074 = vmatprep.subr.bf16.mxu1 %v1114_v2  ;;  %v1132_v20 = vld [vmem:[%s1213_s26 + $0x30] sm:$0xff]   ;;  %v1134_v22 = vld [vmem:[%s1213_s26 + $0x38] sm:$0xff]   ;;  %v1250_v24 = vld [vmem:[%s1332_s2] ss:$0 sm:$0xff] }
  0x14   : > { %v1133_v21 = vld [vmem:[%s1213_s26 + $0x70] sm:$0xff]   ;;  %v1135_v23 = vld [vmem:[%s1213_s26 + $0x78] sm:$0xff]  }
  0x16   : > { %1029 = vmatpush3.bf16.msra.mxu0 %v1114_v2  ;;  %1082 = vmatpush3.bf16.msra.mxu1 %v1114_v2 }
  0x17   : > { %1030 = vmatprep.subr.bf16.mxu0 %v1115_v3  ;;  %1075 = vmatprep.subr.bf16.mxu1 %v1115_v3 }
  0x1a   : > { %1031 = vmatpush3.bf16.msra.mxu0 %v1115_v3  ;;  %1083 = vmatpush3.bf16.msra.mxu1 %v1115_v3 }
  0x1b   : > { %1032 = vmatprep.subr.bf16.mxu0 %v1116_v6  ;;  %1076 = vmatprep.subr.bf16.mxu1 %v1116_v6 }
  0x1e   : > { %1033 = vmatpush3.bf16.msra.mxu0 %v1116_v6  ;;  %1084 = vmatpush3.bf16.msra.mxu1 %v1116_v6 }
  0x1f   : > { %1034 = vmatprep.subr.bf16.mxu0 %v1117_v7  ;;  %1077 = vmatprep.subr.bf16.mxu1 %v1117_v7 }
  0x22   : > { %1035 = vmatpush3.bf16.msra.mxu0 %v1117_v7  ;;  %1085 = vmatpush3.bf16.msra.mxu1 %v1117_v7 }
  0x23   : > { %1036 = vmatprep.subr.bf16.mxu0 %v1118_v8  ;;  %1078 = vmatprep.subr.bf16.mxu1 %v1118_v8 }
  0x26   : > { %1037 = vmatpush3.bf16.msra.mxu0 %v1118_v8  ;;  %1086 = vmatpush3.bf16.msra.mxu1 %v1118_v8 }
  0x27   : > { %1038 = vmatprep.subr.bf16.mxu0 %v1119_v9  ;;  %1079 = vmatprep.subr.bf16.mxu1 %v1119_v9 }
  0x2a   : > { %1039 = vmatpush3.bf16.msra.mxu0 %v1119_v9  ;;  %1087 = vmatpush3.bf16.msra.mxu1 %v1119_v9 }
  0x2d   : > { %1041 = vmatmul.mubr.bf16.vlgmr.msra.gmra.mxu0 %v1122_v10  ;;  %1057 = vmatmul.mubr.bf16.vlgmr.msra.gmra.mxu1 %v1123_v11 }
  0x2e   : > { %1044 = vmatprep.mubr.bf16.mxu0 %v1124_v12  ;;  %1060 = vmatprep.mubr.bf16.mxu1 %v1125_v13 }
  0x35   : > { %1045 = vmatmul.mubr.bf16.gmra.mxu0 %v1126_v14  ;;  %1061 = vmatmul.mubr.bf16.gmra.mxu1 %v1127_v15 }
  0x36   : > { %1048 = vmatprep.mubr.bf16.mxu0 %v1128_v16  ;;  %1064 = vmatprep.mubr.bf16.mxu1 %v1129_v17 }
  0x3d   : > { %1049 = vmatmul.mubr.bf16.gmra.mxu0 %v1130_v18  ;;  %1065 = vmatmul.mubr.bf16.gmra.mxu1 %v1131_v19 }
  0x3e   : > { %1052 = vmatprep.mubr.bf16.mxu0 %v1132_v20  ;;  %1068 = vmatprep.mubr.bf16.mxu1 %v1133_v21 }
  0x45   : > { %1053 = vmatmul.mubr.bf16.gmra.mxu0 %v1134_v22  ;;  %1069 = vmatmul.mubr.bf16.gmra.mxu1 %v1135_v23 }
  0xed   : > { %v1042_v25 = vpop.f32.mrf.mxu0  ;;  %v1058_v26 = vpop.f32.mrf.mxu1 }
  0xee   : > { %v789_v27 = vadd.f32 %v1042_v25, %v1250_v24  ;;  %v805_v28 = vadd.f32 %v1058_v26, %v1250_v24 }
  0xef   : > { %v554_v29 = vpop.f32.mrf.mxu0  ;;  %v618_v30 = vpop.f32.mrf.mxu1 }
  0xf0   : > { %821 = vst [vmem:[%s1255_s19 + $0x10] sm:$0xff] %v789_v27  ;;  %837 = vst [vmem:[%s1255_s19 + $0x90] sm:$0xff] %v805_v28  ;;  %v787_v31 = vadd.f32 %v1250_v24, %v554_v29  ;;  %v803_v32 = vadd.f32 %v1250_v24, %v618_v30 }
  0xf1   : > { %v1043_v33 = vpop.f32.mrf.mxu0  ;;  %v1059_v34 = vpop.f32.mrf.mxu1 }
  0xf2   : > { %819 = vst [vmem:[%s1255_s19] sm:$0xff] %v787_v31  ;;  %835 = vst [vmem:[%s1255_s19 + $0x80] sm:$0xff] %v803_v32  ;;  %v790_v35 = vadd.f32 %v1043_v33, %v1250_v24  ;;  %v806_v36 = vadd.f32 %v1059_v34, %v1250_v24 }
  0xf3   : > { %v557_v37 = vpop.f32.mrf.mxu0  ;;  %v621_v38 = vpop.f32.mrf.mxu1 }
  0xf4   : > { %822 = vst [vmem:[%s1255_s19 + $0x18] sm:$0xff] %v790_v35  ;;  %838 = vst [vmem:[%s1255_s19 + $0x98] sm:$0xff] %v806_v36  ;;  %v788_v39 = vadd.f32 %v1250_v24, %v557_v37  ;;  %v804_v40 = vadd.f32 %v1250_v24, %v621_v38 }
  0xf5   : > { %v1046_v41 = vpop.f32.mrf.mxu0  ;;  %v1062_v42 = vpop.f32.mrf.mxu1 }
  0xf6   : > { %820 = vst [vmem:[%s1255_s19 + $0x8] sm:$0xff] %v788_v39  ;;  %836 = vst [vmem:[%s1255_s19 + $0x88] sm:$0xff] %v804_v40  ;;  %v793_v43 = vadd.f32 %v1046_v41, %v1250_v24  ;;  %v809_v44 = vadd.f32 %v1062_v42, %v1250_v24 }
  0xf7   : > { %v570_v45 = vpop.f32.mrf.mxu0  ;;  %v634_v46 = vpop.f32.mrf.mxu1 }
  0xf8   : > { %825 = vst [vmem:[%s1255_s19 + $0x30] sm:$0xff] %v793_v43  ;;  %841 = vst [vmem:[%s1255_s19 + $0xb0] sm:$0xff] %v809_v44  ;;  %v791_v47 = vadd.f32 %v1250_v24, %v570_v45  ;;  %v807_v48 = vadd.f32 %v1250_v24, %v634_v46 }
  0xf9   : > { %v1047_v49 = vpop.f32.mrf.mxu0  ;;  %v1063_v50 = vpop.f32.mrf.mxu1 }
  0xfa   : > { %823 = vst [vmem:[%s1255_s19 + $0x20] sm:$0xff] %v791_v47  ;;  %839 = vst [vmem:[%s1255_s19 + $0xa0] sm:$0xff] %v807_v48  ;;  %v794_v51 = vadd.f32 %v1047_v49, %v1250_v24  ;;  %v810_v52 = vadd.f32 %v1063_v50, %v1250_v24 }
  0xfb   : > { %v573_v53 = vpop.f32.mrf.mxu0  ;;  %v637_v54 = vpop.f32.mrf.mxu1 }
  0xfc   : > { %826 = vst [vmem:[%s1255_s19 + $0x38] sm:$0xff] %v794_v51  ;;  %842 = vst [vmem:[%s1255_s19 + $0xb8] sm:$0xff] %v810_v52  ;;  %v792_v55 = vadd.f32 %v1250_v24, %v573_v53  ;;  %v808_v56 = vadd.f32 %v1250_v24, %v637_v54 }
  0xfd   : > { %v1050_v57 = vpop.f32.mrf.mxu0  ;;  %v1066_v58 = vpop.f32.mrf.mxu1 }
  0xfe   : > { %824 = vst [vmem:[%s1255_s19 + $0x28] sm:$0xff] %v792_v55  ;;  %840 = vst [vmem:[%s1255_s19 + $0xa8] sm:$0xff] %v808_v56  ;;  %v797_v59 = vadd.f32 %v1050_v57, %v1250_v24  ;;  %v813_v60 = vadd.f32 %v1066_v58, %v1250_v24 }
  0xff   : > { %v586_v61 = vpop.f32.mrf.mxu0  ;;  %v650_v62 = vpop.f32.mrf.mxu1 }
 0x100   : > { %829 = vst [vmem:[%s1255_s19 + $0x50] sm:$0xff] %v797_v59  ;;  %845 = vst [vmem:[%s1255_s19 + $0xd0] sm:$0xff] %v813_v60  ;;  %v795_v63 = vadd.f32 %v1250_v24, %v586_v61  ;;  %v811_v0 = vadd.f32 %v1250_v24, %v650_v62 }
 0x101   : > { %v1051_v1 = vpop.f32.mrf.mxu0  ;;  %v1067_v2 = vpop.f32.mrf.mxu1 }
 0x102   : > { %827 = vst [vmem:[%s1255_s19 + $0x40] sm:$0xff] %v795_v63  ;;  %843 = vst [vmem:[%s1255_s19 + $0xc0] sm:$0xff] %v811_v0  ;;  %v798_v3 = vadd.f32 %v1051_v1, %v1250_v24  ;;  %v814_v4 = vadd.f32 %v1067_v2, %v1250_v24 }
 0x103   : > { %v589_v5 = vpop.f32.mrf.mxu0  ;;  %v653_v6 = vpop.f32.mrf.mxu1 }
 0x104   : > { %830 = vst [vmem:[%s1255_s19 + $0x58] sm:$0xff] %v798_v3  ;;  %846 = vst [vmem:[%s1255_s19 + $0xd8] sm:$0xff] %v814_v4  ;;  %v796_v7 = vadd.f32 %v1250_v24, %v589_v5  ;;  %v812_v8 = vadd.f32 %v1250_v24, %v653_v6 }
 0x105   : > { %v1054_v9 = vpop.f32.mrf.mxu0  ;;  %v1070_v10 = vpop.f32.mrf.mxu1 }
 0x106   : > { %828 = vst [vmem:[%s1255_s19 + $0x48] sm:$0xff] %v796_v7  ;;  %844 = vst [vmem:[%s1255_s19 + $0xc8] sm:$0xff] %v812_v8  ;;  %v801_v11 = vadd.f32 %v1054_v9, %v1250_v24  ;;  %v817_v12 = vadd.f32 %v1070_v10, %v1250_v24 }
 0x107   : > { %v602_v13 = vpop.f32.mrf.mxu0  ;;  %v666_v14 = vpop.f32.mrf.mxu1 }
 0x108   : > { %833 = vst [vmem:[%s1255_s19 + $0x70] sm:$0xff] %v801_v11  ;;  %849 = vst [vmem:[%s1255_s19 + $0xf0] sm:$0xff] %v817_v12  ;;  %v799_v15 = vadd.f32 %v1250_v24, %v602_v13  ;;  %v815_v16 = vadd.f32 %v1250_v24, %v666_v14 }
 0x109   : > { %v1055_v17 = vpop.f32.mrf.mxu0  ;;  %v1071_v18 = vpop.f32.mrf.mxu1 }
 0x10a   : > { %831 = vst [vmem:[%s1255_s19 + $0x60] sm:$0xff] %v799_v15  ;;  %847 = vst [vmem:[%s1255_s19 + $0xe0] sm:$0xff] %v815_v16  ;;  %v802_v19 = vadd.f32 %v1055_v17, %v1250_v24  ;;  %v818_v20 = vadd.f32 %v1071_v18, %v1250_v24 }
 0x10b   : > { %v605_v21 = vpop.f32.mrf.mxu0  ;;  %v669_v22 = vpop.f32.mrf.mxu1 }
 0x10c   : > { %834 = vst [vmem:[%s1255_s19 + $0x78] sm:$0xff] %v802_v19  ;;  %850 = vst [vmem:[%s1255_s19 + $0xf8] sm:$0xff] %v818_v20  ;;  %v800_v23 = vadd.f32 %v1250_v24, %v605_v21  ;;  %v816_v25 = vadd.f32 %v1250_v24, %v669_v22 }
 0x10e   : > { %832 = vst [vmem:[%s1255_s19 + $0x68] sm:$0xff] %v800_v23  ;;  %848 = vst [vmem:[%s1255_s19 + $0xe8] sm:$0xff] %v816_v25 }
 0x10f PF: > { %s13_s14 = sadd.s32 1, %s1158_s14   ;;  %s1334_s12 = smov %s1154_s13 }
 0x110   : > { %p10_p5 = scmp.ge.s32.totalorder %s13_s14, 5   ;;  %s1335_s13 = smov %s1337_s15 }
 0x112   :  { %12 = sbr.rel (!%p10_p5) target bundleno = 2 (0x2), region = 76 }

</bundles_post_ra>
